<compile_context>
chip_gen: v5e
topology: v5e:2x2
jax: 0.10.0
libtpu: 0.0.40
codegen_flags: <defaults>
</compile_context>

<pallas_src>
import functools

import jax
import jax.numpy as jnp
from jax.experimental import pallas as pl
from jax.experimental.pallas import tpu as pltpu

LN_EPS = 1e-5


def _conv_relu_norm_impl(x_prev_ref, x_cur_ref, x_next_ref, w_ref, p_ref, o_ref,
                         *, kernel_size, seq_len, ragged):
    # x_prev_ref/x_next_ref: (C_in, 128) halo strips (None when kernel_size==1)
    # x_cur_ref            : (C_in, TT) current time tile
    # w_ref                : (k, C_out, C_in) conv weights (signal dtype)
    # p_ref                : (C_out, 3) f32 = [conv_bias | ln_gamma | ln_beta]
    # o_ref                : (C_out, TT)
    pad = kernel_size // 2
    c_in, tile_t = x_cur_ref.shape
    c_out = o_ref.shape[0]
    t0 = pl.program_id(1) * tile_t          # global time index of output col 0

    cur = x_cur_ref[...]
    if ragged and pad > 0:
        # Last time tile overruns the array: Pallas pads the read with garbage,
        # which would otherwise leak into valid outputs via positive conv taps.
        col = jax.lax.broadcasted_iota(jnp.int32, (1, tile_t), 1)
        cur = jnp.where(col + t0 < seq_len, cur, jnp.zeros_like(cur))

    if pad > 0:
        strip_t = x_prev_ref.shape[1]
        left = x_prev_ref[:, strip_t - pad:]                 # (C_in, pad)
        right = x_next_ref[:, :pad]                          # (C_in, pad)
        # Left halo is only invalid on the first tile (conv zero padding).
        left = jnp.where(t0 > 0, left, jnp.zeros_like(left))
        # Right halo: per-column scalar gates (pad is 1-2, negligible cost).
        rcols = []
        for j in range(pad):
            ok = (t0 + tile_t + j) < seq_len
            rcols.append(jnp.where(ok, right[:, j:j + 1],
                                   jnp.zeros_like(right[:, j:j + 1])))
        right = rcols[0] if pad == 1 else jnp.concatenate(rcols, axis=1)
    else:
        left = right = None

    # Conv as per-tap MXU matmuls accumulated in f32 (shift s = tap - pad).
    acc = None
    for tap in range(kernel_size):
        s = tap - pad
        if s == 0:
            x_s = cur
        elif s < 0:
            x_s = jnp.concatenate([left[:, pad + s:], cur[:, :tile_t + s]], axis=1)
        else:
            x_s = jnp.concatenate([cur[:, s:], right[:, :s]], axis=1)
        part = jnp.dot(w_ref[tap], x_s, preferred_element_type=jnp.float32)
        acc = part if acc is None else acc + part

    bias = p_ref[:, 0:1]                    # (C_out, 1), f32
    gamma = p_ref[:, 1:2]
    beta = p_ref[:, 2:3]
    acc = jnp.maximum(acc + bias, 0.0)      # conv bias + ReLU

    # LayerNorm over channels (sublane axis); two-pass statistics in f32.
    inv_c = 1.0 / c_out
    mean = jnp.sum(acc, axis=0, keepdims=True) * inv_c       # (1, TT)
    centered = acc - mean
    var = jnp.sum(centered * centered, axis=0, keepdims=True) * inv_c
    inv_std = jax.lax.rsqrt(var + LN_EPS)
    out = centered * inv_std * gamma + beta

    # TODO(synk): Dropout is identity (eval / p=0.0); no RNG path implemented.
    o_ref[...] = out.astype(o_ref.dtype)


def _kernel_halo(x_prev_ref, x_cur_ref, x_next_ref, w_ref, p_ref, o_ref, **kw):
    _conv_relu_norm_impl(x_prev_ref, x_cur_ref, x_next_ref, w_ref, p_ref, o_ref, **kw)


def _kernel_nohalo(x_cur_ref, w_ref, p_ref, o_ref, **kw):
    _conv_relu_norm_impl(None, x_cur_ref, None, w_ref, p_ref, o_ref, **kw)


def _physical_vmem_bytes():
    try:
        info = pltpu.get_tpu_info()
        for attr in ("vmem_capacity_bytes", "vmem_bytes", "vmem_size_bytes"):
            v = getattr(info, attr, None)
            if v:
                return int(v)
    except Exception:
        pass
    return 64 * 2**20          # conservative default (v7x: 64 MiB per TensorCore)


def conv_relu_norm(signal, conv_weight, conv_bias, ln_gamma, ln_beta,
                   *, kernel_size, time_tile=1024):
    """signal: (B, C_in, T) (PyTorch NCL). Returns (B, C_out, T)."""
    B, C_in, T = signal.shape
    C_out = conv_weight.shape[0]
    if kernel_size % 2 != 1:
        # FastPitch uses odd kernels (default 1, typically 3); "same" length
        # only holds for odd k with padding = k // 2.
        raise NotImplementedError("conv_relu_norm: only odd kernel_size supported")
    pad = kernel_size // 2
    strip_t = 128

    # Pad time to a multiple of 128: lane-dense tiles everywhere, and the real
    # zero columns double as the conv's right-side zero padding.
    T_pad = ((T + 127) // 128) * 128
    x = signal if T_pad == T else jnp.pad(signal, ((0, 0), (0, 0), (0, T_pad - T)))

    itemsize = jnp.dtype(signal.dtype).itemsize

    def vmem_estimate(tt):
        halo = 2 * strip_t if pad > 0 else 0
        io = 2 * itemsize * (C_in * (tt + halo) + C_out * tt)     # double-buffered I/O
        tmp = 4 * tt * ((kernel_size + 1) * C_in + 3 * C_out)     # f32 temporaries
        par = 2 * itemsize * kernel_size * C_out * C_in + 4 * C_out * 128
        return io + tmp + par + (2 << 20)

    phys_vmem = _physical_vmem_bytes()
    tile_t = max(128, (min(time_tile, T_pad) // 128) * 128)
    while tile_t > 128 and vmem_estimate(tile_t) > int(0.70 * phys_vmem):
        tile_t = max(128, ((tile_t // 2) // 128) * 128)
    vmem_limit = int(min(int(0.75 * phys_vmem),
                         max(32 * 2**20, vmem_estimate(tile_t))))

    n_t = pl.cdiv(T_pad, tile_t)
    ragged = (T_pad % tile_t) != 0          # static decision for the mask path
    rpb = tile_t // strip_t                 # 128-wide strip blocks per time tile
    n_strip = T_pad // strip_t

    # Parameters: weights as (k, C_out, C_in) in the signal dtype (bf16 input
    # -> bf16 MXU operands + halved HBM bytes); bias/gamma/beta packed into one
    # f32 (C_out, 3) operand (single constant-index DMA).
    w3 = jnp.transpose(conv_weight, (2, 0, 1)).astype(signal.dtype)
    params = jnp.stack([conv_bias, ln_gamma, ln_beta], axis=1).astype(jnp.float32)

    def cur_map(b, t):
        return (b, 0, t)

    def const_map2(b, t):
        return (0, 0)

    def const_map3(b, t):
        return (0, 0, 0)

    common = dict(kernel_size=kernel_size, seq_len=T_pad, ragged=ragged)

    if pad > 0:
        # Clamped halo-strip index maps: clamping keeps the DMA in bounds; the
        # in-kernel scalar gates zero whatever a clamped copy brought in.
        def prev_map(b, t):
            return (b, 0, jnp.maximum(t * rpb - 1, 0))

        def next_map(b, t):
            return (b, 0, jnp.minimum((t + 1) * rpb, n_strip - 1))

        kernel = functools.partial(_kernel_halo, **common)
        in_specs = [
            pl.BlockSpec((None, C_in, strip_t), prev_map),
            pl.BlockSpec((None, C_in, tile_t), cur_map),
            pl.BlockSpec((None, C_in, strip_t), next_map),
            pl.BlockSpec((kernel_size, C_out, C_in), const_map3),
            pl.BlockSpec((C_out, 3), const_map2),
        ]
        args = (x, x, x, w3, params)
    else:
        # kernel_size == 1: no halo operands at all (1 input DMA per step).
        kernel = functools.partial(_kernel_nohalo, **common)
        in_specs = [
            pl.BlockSpec((None, C_in, tile_t), cur_map),
            pl.BlockSpec((kernel_size, C_out, C_in), const_map3),
            pl.BlockSpec((C_out, 3), const_map2),
        ]
        args = (x, w3, params)

    grid_spec = pltpu.PrefetchScalarGridSpec(
        num_scalar_prefetch=0,
        grid=(B, n_t),
        in_specs=in_specs,
        out_specs=pl.BlockSpec((None, C_out, tile_t), cur_map),
    )

    out = pl.pallas_call(
        kernel,
        out_shape=jax.ShapeDtypeStruct((B, C_out, T_pad), signal.dtype),
        grid_spec=grid_spec,
        compiler_params=pltpu.CompilerParams(
            # Both axes parallel: with B>=2 or n_t>=2 work shards across the two
            # v7x TensorCores; on v5e/v6e this is harmless.
            dimension_semantics=("parallel", "parallel"),
            vmem_limit_bytes=vmem_limit,
        ),
    )(*args)
    return out if T_pad == T else out[:, :, :T]


def _reference(signal, conv_weight, conv_bias, ln_gamma, ln_beta, *, kernel_size):
    """Plain-JAX reference matching the PyTorch forward (f32 accumulation)."""
    pad = kernel_size // 2
    out = jax.lax.conv_general_dilated(
        signal, conv_weight.astype(signal.dtype),
        window_strides=(1,), padding=[(pad, pad)],
        dimension_numbers=("NCH", "OIH", "NCH"),
        preferred_element_type=jnp.float32,
    ) + conv_bias[None, :, None].astype(jnp.float32)
    out = jax.nn.relu(out)
    out_t = jnp.transpose(out, (0, 2, 1))
    mean = jnp.mean(out_t, axis=-1, keepdims=True)
    var = jnp.mean((out_t - mean) ** 2, axis=-1, keepdims=True)
    out_t = (out_t - mean) * jax.lax.rsqrt(var + LN_EPS) * ln_gamma + ln_beta
    return jnp.transpose(out_t, (0, 2, 1))


def _run_case(key, *, B, C_in, C_out, T, K, dtype, atol, rtol):
    k_sig, k_w, k_b, k_g, k_be = jax.random.split(key, 5)
    signal = jax.random.normal(k_sig, (B, C_in, T), jnp.float32).astype(dtype)
    conv_weight = (0.1 * jax.random.normal(k_w, (C_out, C_in, K), jnp.float32)).astype(dtype)
    conv_bias = 0.1 * jax.random.normal(k_b, (C_out,), jnp.float32)
    ln_gamma = 1.0 + 0.05 * jax.random.normal(k_g, (C_out,), jnp.float32)
    ln_beta = 0.05 * jax.random.normal(k_be, (C_out,), jnp.float32)

    out = conv_relu_norm(signal, conv_weight, conv_bias, ln_gamma, ln_beta,
                         kernel_size=K)
    out = jax.block_until_ready(out)
    ref = _reference(signal, conv_weight, conv_bias, ln_gamma, ln_beta,
                     kernel_size=K)
    assert out.shape == (B, C_out, T), out.shape
    out_f32 = out.astype(jnp.float32)
    err = float(jnp.max(jnp.abs(out_f32 - ref)))
    assert jnp.allclose(out_f32, ref, atol=atol, rtol=rtol), err
    return err


if __name__ == "__main__":
    key = jax.random.PRNGKey(0)
    k1, k2, k3, k4 = jax.random.split(key, 4)

    # f32, K=3: two 1024-wide time tiles, halo strips, non-ragged fast-mask path.
    _run_case(k1, B=2, C_in=16, C_out=32, T=2048, K=3, dtype=jnp.float32,
              atol=1e-4, rtol=1e-4)
    # bf16, K=1 (FastPitch default): no halo operands, ragged last tile,
    # bf16 MXU operands / bf16 HBM storage (v6e / v7x fast path).
    _run_case(k2, B=2, C_in=16, C_out=32, T=1280, K=1, dtype=jnp.bfloat16,
              atol=2e-2, rtol=2e-2)
    # f32, K=3: ragged last tile combined with halo strips.
    _run_case(k3, B=1, C_in=8, C_out=16, T=1152, K=3, dtype=jnp.float32,
              atol=1e-4, rtol=1e-4)
    # f32, K=5, odd T: wrapper zero-pads time to 256, single tile, clamped+gated
    # right strip.
    _run_case(k4, B=1, C_in=8, C_out=16, T=200, K=5, dtype=jnp.float32,
              atol=1e-4, rtol=1e-4)

    print("KERNEL_OK")
</pallas_src>

<mosaic_0001>
module attributes {stable_mosaic.version = 11 : i64} {
  func.func @_kernel_halo(%arg0: i32, %arg1: i32, %arg2: memref<1x16x128xf32, #tpu.memory_space<vmem>>, %arg3: memref<1x16x1024xf32, #tpu.memory_space<vmem>>, %arg4: memref<1x16x128xf32, #tpu.memory_space<vmem>>, %arg5: memref<3x32x16xf32, #tpu.memory_space<vmem>>, %arg6: memref<32x3xf32, #tpu.memory_space<vmem>>, %arg7: memref<1x32x1024xf32, #tpu.memory_space<vmem>>) attributes {dimension_semantics = [#tpu.dimension_semantics<parallel>, #tpu.dimension_semantics<parallel>], iteration_bounds = array<i64: 2, 2>, scalar_prefetch = 0 : i64, scratch_operands = 0 : i64, tpu.core_type = #tpu.core_type<tc>, window_params = [{transform_indices = @transform_0, window_bounds = array<i64: 1, 16, 128>}, {transform_indices = @transform_1, window_bounds = array<i64: 1, 16, 1024>}, {transform_indices = @transform_2, window_bounds = array<i64: 1, 16, 128>}, {pipeline_mode = #tpu.pipeline_mode<synchronous>, transform_indices = @transform_3, window_bounds = array<i64: 3, 32, 16>}, {pipeline_mode = #tpu.pipeline_mode<synchronous>, transform_indices = @transform_4, window_bounds = array<i64: 32, 3>}, {transform_indices = @transform_5, window_bounds = array<i64: 1, 32, 1024>}]} {
    %c1024_i32 = arith.constant 1024 : i32
    %0 = arith.muli %arg1, %c1024_i32 : i32
    %c0 = arith.constant 0 : index
    %c0_0 = arith.constant 0 : index
    %c0_1 = arith.constant 0 : index
    %1 = vector.load %arg3[%c0, %c0_0, %c0_1] : memref<1x16x1024xf32, #tpu.memory_space<vmem>>, vector<1x16x1024xf32>
    %2 = vector.shape_cast %1 : vector<1x16x1024xf32> to vector<16x1024xf32>
    %c0_2 = arith.constant 0 : index
    %c0_3 = arith.constant 0 : index
    %c127 = arith.constant 127 : index
    %3 = vector.load %arg2[%c0_2, %c0_3, %c127] : memref<1x16x128xf32, #tpu.memory_space<vmem>>, vector<1x16x1xf32>
    %4 = vector.shape_cast %3 : vector<1x16x1xf32> to vector<16x1xf32>
    %c0_4 = arith.constant 0 : index
    %c0_5 = arith.constant 0 : index
    %c0_6 = arith.constant 0 : index
    %5 = vector.load %arg4[%c0_4, %c0_5, %c0_6] : memref<1x16x128xf32, #tpu.memory_space<vmem>>, vector<1x16x1xf32>
    %6 = vector.shape_cast %5 : vector<1x16x1xf32> to vector<16x1xf32>
    %c0_i32 = arith.constant 0 : i32
    %7 = arith.cmpi sgt, %0, %c0_i32 : i32
    %cst = arith.constant 0.000000e+00 : f32
    %8 = vector.broadcast %cst : f32 to vector<16x1xf32>
    %9 = arith.select %7, %4, %8 : vector<16x1xf32>
    %c1024_i32_7 = arith.constant 1024 : i32
    %10 = arith.addi %0, %c1024_i32_7 : i32
    %c0_i32_8 = arith.constant 0 : i32
    %11 = arith.addi %10, %c0_i32_8 : i32
    %c2048_i32 = arith.constant 2048 : i32
    %12 = arith.cmpi slt, %11, %c2048_i32 : i32
    %cst_9 = arith.constant 0.000000e+00 : f32
    %13 = vector.broadcast %cst_9 : f32 to vector<16x1xf32>
    %14 = arith.select %12, %6, %13 : vector<16x1xf32>
    %15 = vector.extract_strided_slice %2 {offsets = [0, 0], sizes = [16, 1023], strides = [1, 1]} : vector<16x1024xf32> to vector<16x1023xf32>
    %16 = tpu.concatenate %9, %15 in 1 : vector<16x1xf32>, vector<16x1023xf32> -> vector<16x1024xf32>
    %c0_10 = arith.constant 0 : index
    %c0_11 = arith.constant 0 : index
    %c0_12 = arith.constant 0 : index
    %17 = vector.load %arg5[%c0_10, %c0_11, %c0_12] : memref<3x32x16xf32, #tpu.memory_space<vmem>>, vector<1x32x16xf32>
    %18 = vector.shape_cast %17 : vector<1x32x16xf32> to vector<32x16xf32>
    %cst_13 = arith.constant dense<0.000000e+00> : vector<32x1024xf32>
    %19 = tpu.matmul %18, %16, %cst_13 {dimension_numbers = #tpu.dot_dimension_numbers<[1], [0], [0], [1], [0, 0, 1, 1], [], []>} : vector<32x16xf32>, vector<16x1024xf32>, vector<32x1024xf32> -> vector<32x1024xf32>
    %c1 = arith.constant 1 : index
    %c0_14 = arith.constant 0 : index
    %c0_15 = arith.constant 0 : index
    %20 = vector.load %arg5[%c1, %c0_14, %c0_15] : memref<3x32x16xf32, #tpu.memory_space<vmem>>, vector<1x32x16xf32>
    %21 = vector.shape_cast %20 : vector<1x32x16xf32> to vector<32x16xf32>
    %cst_16 = arith.constant dense<0.000000e+00> : vector<32x1024xf32>
    %22 = tpu.matmul %21, %2, %cst_16 {dimension_numbers = #tpu.dot_dimension_numbers<[1], [0], [0], [1], [0, 0, 1, 1], [], []>} : vector<32x16xf32>, vector<16x1024xf32>, vector<32x1024xf32> -> vector<32x1024xf32>
    %23 = arith.addf %19, %22 : vector<32x1024xf32>
    %24 = vector.extract_strided_slice %2 {offsets = [0, 1], sizes = [16, 1023], strides = [1, 1]} : vector<16x1024xf32> to vector<16x1023xf32>
    %25 = tpu.concatenate %24, %14 in 1 : vector<16x1023xf32>, vector<16x1xf32> -> vector<16x1024xf32>
    %c2 = arith.constant 2 : index
    %c0_17 = arith.constant 0 : index
    %c0_18 = arith.constant 0 : index
    %26 = vector.load %arg5[%c2, %c0_17, %c0_18] : memref<3x32x16xf32, #tpu.memory_space<vmem>>, vector<1x32x16xf32>
    %27 = vector.shape_cast %26 : vector<1x32x16xf32> to vector<32x16xf32>
    %cst_19 = arith.constant dense<0.000000e+00> : vector<32x1024xf32>
    %28 = tpu.matmul %27, %25, %cst_19 {dimension_numbers = #tpu.dot_dimension_numbers<[1], [0], [0], [1], [0, 0, 1, 1], [], []>} : vector<32x16xf32>, vector<16x1024xf32>, vector<32x1024xf32> -> vector<32x1024xf32>
    %29 = arith.addf %23, %28 : vector<32x1024xf32>
    %c0_20 = arith.constant 0 : index
    %c0_21 = arith.constant 0 : index
    %30 = vector.load %arg6[%c0_20, %c0_21] : memref<32x3xf32, #tpu.memory_space<vmem>>, vector<32x1xf32>
    %c0_22 = arith.constant 0 : index
    %c1_23 = arith.constant 1 : index
    %31 = vector.load %arg6[%c0_22, %c1_23] : memref<32x3xf32, #tpu.memory_space<vmem>>, vector<32x1xf32>
    %c0_24 = arith.constant 0 : index
    %c2_25 = arith.constant 2 : index
    %32 = vector.load %arg6[%c0_24, %c2_25] : memref<32x3xf32, #tpu.memory_space<vmem>>, vector<32x1xf32>
    %33 = vector.broadcast %30 : vector<32x1xf32> to vector<32x1024xf32>
    %34 = arith.addf %29, %33 : vector<32x1024xf32>
    %cst_26 = arith.constant 0.000000e+00 : f32
    %35 = vector.broadcast %cst_26 : f32 to vector<32x1024xf32>
    %36 = arith.maximumf %34, %35 : vector<32x1024xf32>
    %cst_27 = arith.constant dense<0.000000e+00> : vector<1024xf32>
    %37 = vector.multi_reduction <add>, %36, %cst_27 [0] : vector<32x1024xf32> to vector<1024xf32>
    %38 = vector.shape_cast %37 : vector<1024xf32> to vector<1x1024xf32>
    %cst_28 = arith.constant 3.125000e-02 : f32
    %39 = vector.broadcast %cst_28 : f32 to vector<1x1024xf32>
    %40 = arith.mulf %38, %39 : vector<1x1024xf32>
    %41 = vector.broadcast %40 : vector<1x1024xf32> to vector<32x1024xf32>
    %42 = arith.subf %36, %41 : vector<32x1024xf32>
    %43 = arith.mulf %42, %42 : vector<32x1024xf32>
    %cst_29 = arith.constant dense<0.000000e+00> : vector<1024xf32>
    %44 = vector.multi_reduction <add>, %43, %cst_29 [0] : vector<32x1024xf32> to vector<1024xf32>
    %45 = vector.shape_cast %44 : vector<1024xf32> to vector<1x1024xf32>
    %cst_30 = arith.constant 3.125000e-02 : f32
    %46 = vector.broadcast %cst_30 : f32 to vector<1x1024xf32>
    %47 = arith.mulf %45, %46 : vector<1x1024xf32>
    %cst_31 = arith.constant 9.99999974E-6 : f32
    %48 = vector.broadcast %cst_31 : f32 to vector<1x1024xf32>
    %49 = arith.addf %47, %48 : vector<1x1024xf32>
    %50 = math.rsqrt %49 : vector<1x1024xf32>
    %51 = vector.broadcast %50 : vector<1x1024xf32> to vector<32x1024xf32>
    %52 = arith.mulf %42, %51 : vector<32x1024xf32>
    %53 = vector.broadcast %31 : vector<32x1xf32> to vector<32x1024xf32>
    %54 = arith.mulf %52, %53 : vector<32x1024xf32>
    %55 = vector.broadcast %32 : vector<32x1xf32> to vector<32x1024xf32>
    %56 = arith.addf %54, %55 : vector<32x1024xf32>
    %c0_32 = arith.constant 0 : index
    %c0_33 = arith.constant 0 : index
    %c0_34 = arith.constant 0 : index
    %57 = vector.load %arg7[%c0_32, %c0_33, %c0_34] : memref<1x32x1024xf32, #tpu.memory_space<vmem>>, vector<1x32x1024xf32>
    %58 = vector.shape_cast %57 : vector<1x32x1024xf32> to vector<32x1024xf32>
    %59 = vector.shape_cast %56 : vector<32x1024xf32> to vector<1x32x1024xf32>
    tpu.vector_store %arg7[%c0_32, %c0_33, %c0_34], %59 {strides = array<i32>} : memref<1x32x1024xf32, #tpu.memory_space<vmem>>, vector<1x32x1024xf32>,
    return
  }
  func.func @transform_0(%arg0: i32, %arg1: i32) -> (i32, i32, i32) {
    %c8_i32 = arith.constant 8 : i32
    %0 = arith.muli %arg1, %c8_i32 : i32
    %c1_i32 = arith.constant 1 : i32
    %1 = arith.subi %0, %c1_i32 : i32
    %c0_i32 = arith.constant 0 : i32
    %2 = arith.maxsi %1, %c0_i32 : i32
    %c0_i32_0 = arith.constant 0 : i32
    %c0_i32_1 = arith.constant 0 : i32
    return %arg0, %c0_i32_0, %2 : i32, i32, i32
  }
  func.func @transform_1(%arg0: i32, %arg1: i32) -> (i32, i32, i32) {
    %c0_i32 = arith.constant 0 : i32
    %c0_i32_0 = arith.constant 0 : i32
    return %arg0, %c0_i32, %arg1 : i32, i32, i32
  }
  func.func @transform_2(%arg0: i32, %arg1: i32) -> (i32, i32, i32) {
    %c1_i32 = arith.constant 1 : i32
    %0 = arith.addi %arg1, %c1_i32 : i32
    %c8_i32 = arith.constant 8 : i32
    %1 = arith.muli %0, %c8_i32 : i32
    %c15_i32 = arith.constant 15 : i32
    %2 = arith.minsi %1, %c15_i32 : i32
    %c0_i32 = arith.constant 0 : i32
    %c0_i32_0 = arith.constant 0 : i32
    return %arg0, %c0_i32, %2 : i32, i32, i32
  }
  func.func @transform_3(%arg0: i32, %arg1: i32) -> (i32, i32, i32) {
    %c0_i32 = arith.constant 0 : i32
    %c0_i32_0 = arith.constant 0 : i32
    %c0_i32_1 = arith.constant 0 : i32
    %c0_i32_2 = arith.constant 0 : i32
    return %c0_i32, %c0_i32_0, %c0_i32_1 : i32, i32, i32
  }
  func.func @transform_4(%arg0: i32, %arg1: i32) -> (i32, i32) {
    %c0_i32 = arith.constant 0 : i32
    %c0_i32_0 = arith.constant 0 : i32
    %c0_i32_1 = arith.constant 0 : i32
    return %c0_i32, %c0_i32_0 : i32, i32
  }
  func.func @transform_5(%arg0: i32, %arg1: i32) -> (i32, i32, i32) {
    %c0_i32 = arith.constant 0 : i32
    %c0_i32_0 = arith.constant 0 : i32
    return %arg0, %c0_i32, %arg1 : i32, i32, i32
  }
}

</mosaic_0001>

<bundles_post_ra>
// kernel: tpu_custom_call.1
= control target key start
LH: loop header
LB: loop body
LE: loop exit
PB: predicated region body
PF: predicated region fallthrough
CT: control target
= control target key end

     0   :  { %s4287_s0 = inlined_call_operand.hbm [shape: f32[2,16,2048], index: 0, kind: input, shape index: {}]   ;;  %s4288_s1 = inlined_call_operand.hbm [shape: f32[2,16,2048], index: 1, kind: input, shape index: {}]   ;;  %s4289_s2 = inlined_call_operand.hbm [shape: f32[2,16,2048], index: 2, kind: input, shape index: {}]   ;;  %s4290_s3 = inlined_call_operand.vmem [shape: f32[3,32,16], index: 3, kind: input, shape index: {}]   ;;  %s4291_s4 = inlined_call_operand.vmem [shape: f32[32,3], index: 4, kind: input, shape index: {}]   ;;  %s4292_s5 = inlined_call_operand.hbm [shape: f32[2,32,2048], index: 5, kind: output, shape index: {}]  }
   0x1   :  { %4343 = sst [smem:[#allocation38_spill]] %s4287_s0 }
   0x2   :  { %4344 = sst [smem:[#allocation39_spill]] %s4288_s1 }
   0x3   :  { %4345 = sst [smem:[#allocation40_spill]] %s4289_s2 }
   0x4   :  { %4346 = sst [smem:[#allocation41_spill]] %s4290_s3 }
   0x5   :  { %4347 = sst [smem:[#allocation42_spill]] %s4291_s4 }
   0x6   :  { %4348 = sst [smem:[#allocation43_spill]] %s4292_s5 }
   0x7   :  { %10 = vsyncpa [#allocation3], 0 }
   0x8   :  { %12 = vsyncpa [#allocation3 + $0x1], 0 }
   0x9   :  { %13 = vsyncpa [#allocation6], 0 }
   0xa   :  { %15 = vsyncpa [#allocation6 + $0x1], 0 }
   0xb   :  { %16 = vsyncpa [#allocation4], 0 }
   0xc   :  { %18 = vsyncpa [#allocation4 + $0x1], 0  ;;  %s2784_s18 = smov 0   ;;  %s2786_s19 = smov 0  }
   0xd   :  { %s2788_s20 = smov 0   ;;  %s2790_s21 = smov 0  }
   0xe   :  { %s2792_s22 = smov 0   ;;  %s2794_s23 = smov 0  }
   0xf   :  { %s2796_s24 = smov 0   ;;  %s2798_s25 = smov 0  }
  0x10   :  { %s2800_s26 = smov 0   ;;  %s2802_s27 = smov 0  }
  0x11   :  { %s2804_s28 = smov 0   ;;  %s2806_s29 = smov 0  }
  0x12   :  { %s2808_s30 = smov 0   ;;  %s2810_s6 = smov 0  }
  0x13 LB: > { %4349 = sst [smem:[#allocation13_spill]] %s2699_s21  ;;  %s2855_s7 = sadd.s32 4294967295, %s2739_s6   ;;  %s2739_s6 = sphi %s2810_s6, %s24_s6   ;;  %s2735_s30 = sphi %s2808_s30, %s4458_s30   ;;  %s2731_s29 = sphi %s2806_s29, %s4457_s29   ;;  %s2727_s28 = sphi %s2804_s28, %s4456_s28   ;;  %s2723_s27 = sphi %s2802_s27, %s4455_s27   ;;  %s2719_s26 = sphi %s2800_s26, %s4467_s26   ;;  %s2715_s25 = sphi %s2798_s25, %s4466_s25   ;;  %s2711_s24 = sphi %s2796_s24, %s4465_s24   ;;  %s2707_s23 = sphi %s2794_s23, %s4464_s23   ;;  %s2703_s22 = sphi %s2792_s22, %s4463_s22   ;;  %s2699_s21 = sphi %s2790_s21, %s4453_s21   ;;  %s2695_s20 = sphi %s2788_s20, %s4462_s20   ;;  %s2691_s19 = sphi %s2786_s19, %s4461_s19   ;;  %s2687_s18 = sphi %s2784_s18, %s4460_s18  }
  0x14   : > { %4350 = sst [smem:[#allocation14_spill]] %s2703_s22  ;;  %s2075_s8 = sadd.s32 4294967294, %s2739_s6  }
  0x15   : > { %4351 = sst [smem:[#allocation15_spill]] %s2723_s27  ;;  %s33_s9 = sadd.s32 1, %s2731_s29 }
  0x16   : > { %4352 = sst [smem:[#allocation16_spill]] %s2727_s28  ;;  %s36_s10 = sadd.s32 1, %s2735_s30 }
  0x17   : > { %4353 = sst [smem:[#allocation17_spill]] %s2731_s29  ;;  %p34_p0 = scmp.ge.s32.totalorder %s33_s9, 2 }
  0x18   : > { %4354 = sst [smem:[#allocation18_spill]] %s2735_s30  ;;  %s2861_s11 = sshll.u32 %s2731_s29, 3 }
  0x19   : > { %p61_p1 = scmp.eq.s32.totalorder %s2739_s6, 0  ;;  %p67_p2 = scmp.eq.s32.totalorder %s2855_s7, 0 }
  0x1a   : > { %s4469_s9 = smov (%p34_p0, %s33_s9), 0  ;;  %s4471_s10 = smov (!%p34_p0, %s36_s10), %s2735_s30 }
  0x1b   : > { %4355 = sst [smem:[#allocation19_spill]] %s4469_s9  ;;  %s4294_s12 = sshll.u32 %s4469_s9, 3 }
  0x1c   : > { %p88_p3 = scmp.ne.s32.totalorder %s2707_s23, %s2703_s22  ;;  %p94_p4 = scmp.ne.s32.totalorder %s2703_s22, %s2699_s21 }
  0x1d   : > { %s2214_s15 = sadd.s32 8, %s2861_s11  ;;  %s2216_s14 = sadd.s32 8, %s4294_s12 }
  0x1e   : > { %p2881_p5 = por %p88_p3, %p61_p1  ;;  %p106_p6 = scmp.lt.s32.totalorder %s2214_s15, 15 }
  0x1f   : > { %p2887_p7 = por %p94_p4, %p67_p2  ;;  %p110_p8 = scmp.lt.s32.totalorder %s2216_s14, 15 }
  0x20   : > { %s4473_s15 = smov (!%p106_p6, %s2214_s15), 15  ;;  %p198_p9 = scmp.eq.s32.totalorder %s2855_s7, 3 }
  0x21   : > { %s4357_s17 = scalar_select %p2887_p7, 1, 0 }
  0x22   : > { %p204_p10 = scmp.eq.s32.totalorder %s2075_s8, 3  ;;  %s4475_s14 = smov (!%p110_p8, %s2216_s14), 15 }
  0x23   : > { %4358 = sst [smem:[#allocation20_spill]] %s4357_s17  ;;  %p2898_p11 = por %p198_p9, %p88_p3 }
  0x24   : > { %p2902_p12 = por %p204_p10, %p94_p4  ;;  %p2241_p13 = scmp.lt.s32.totalorder %s2739_s6, 4 }
  0x25   : > { %s4359_s13 = scalar_select %p2898_p11, 1, 0 }
  0x26   : > { %s4361_s21 = scalar_select %p2902_p12, 1, 0 }
  0x27   : > { %4360 = sst [smem:[#allocation21_spill]] %s4359_s13  ;;  %s2910_s5 = sshll.u32 %s2735_s30, 5 }
  0x28   : > { %4362 = sst [smem:[#allocation22_spill]] %s4361_s21  ;;  %s257_s28 = sand.u32 1, %s2739_s6  }
  0x29   : > { %s259_s8 = sand.u32 1, %s2707_s23   ;;  %s266_s3 = sadd.s32 %s2910_s5, %s2861_s11 }
  0x2a   : > { %s2089_s4 = sshll.u32 %s259_s8, 7  ;;  %s2092_s27 = sshll.u32 %s266_s3, 3 }
  0x2b   : > { %s261_s17 = scalar_lea.vmem [#allocation5], %s2089_s4  ;;  %s4363_s1 = sld [smem:[#allocation39_spill]] }
  0x2c   : > { %s271_s13 = sshll.u32 %s261_s17, 4  ;;  %p2231_p0 = pnand %p2241_p13, %p2881_p5  ;;  %s272_s13 = int_to_ptr.vmem [resolvable:$true] %s271_s13 }
  0x2d   : > { %s2923_s8 = scalar_lea.sflag [#allocation6], %s257_s28  ;;  %s4305_s3 = smov 2048  }
  0x2e   : > { %s2742_s4 = smov 1024   ;;  %s2743_s17 = smov 64  }
  0x2f   : > { %p2097_p3 = scmp.ge.s32.totalorder %s2739_s6, 1  ;;  %p306_p4 = scmp.lt.s32.totalorder %s2739_s6, 5 }
  0x30   : > { %p38_p6 = scmp.ge.s32.totalorder %s4471_s10, 2  ;;  %s2077_s22 = sadd.s32 4294967295, %s2861_s11 }
  0x31   : > { %s268_s12 = scalar_lea.hbm %s4363_s1, %s2092_s27  ;;  %p2929_p5 = pnand %p2097_p3, %p306_p4 }
  0x32   : > { %s269_s21 = sshll.u32 %s268_s12, 4  ;;  %s4365_s27 = sshll.u32 %s4469_s9, 3  ;;  %s270_s21 = int_to_ptr.hbm [resolvable:$true] %s269_s21 }
  0x33   : > { %2233 = dma.hbm_to_vmem [thread:$0]  (!%p2231_p0), %s270_s21, 2048, %s272_s13, %s2923_s8, %s4305_s3, %s2742_s4, %s2743_s17  }
  0x34   : > { %s2079_s28 = sadd.s32 4294967295, %s4365_s27  ;;  %s4477_s10 = smov (%p38_p6, %s4471_s10), 0 }
  0x35   : > { %4366 = sst [smem:[#allocation23_spill]] %s4477_s10  ;;  %p42_p8 = scmp.gt.s32.totalorder %s2077_s22, 0 }
  0x36   : > { %p46_p9 = scmp.gt.s32.totalorder %s2079_s28, 0  ;;  %s48_s21 = ssub.s32 %s2735_s30, %s4477_s10 }
  0x37   : > { %s53_s12 = sadd.s32 1, %s2719_s26  ;;  %s4479_s22 = smov (!%p42_p8, %s2077_s22), 0 }
  0x38   : > { %s4481_s28 = smov (!%p46_p9, %s2079_s28), 0  ;;  %p60_p10 = scmp.ne.s32.totalorder %s2719_s26, %s2715_s25 }
  0x39   : > { %p66_p0 = scmp.ne.s32.totalorder %s2715_s25, %s2711_s24  ;;  %s49_s11 = ssub.s32 %s4479_s22, %s4481_s28 }
  0x3a   : > { %s4367_s13 = ssub.s32 %s2731_s29, %s4469_s9  ;;  %s50_s4 = sor.u32 %s49_s11, %s48_s21 }
  0x3b   : > { %s78_s16 = sor.u32 %s4367_s13, %s48_s21  ;;  %p2952_p3 = por %p61_p1, %p60_p10 }
  0x3c   : > { %p51_p4 = scmp.eq.s32.totalorder %s50_s4, 0  ;;  %p2958_p6 = por %p67_p2, %p66_p0 }
  0x3d   : > { %p79_p8 = scmp.eq.s32.totalorder %s78_s16, 0  ;;  %s4370_s3 = ssub.s32 %s4473_s15, %s4475_s14 }
  0x3e   : > { %s114_s24 = sor.u32 %s4370_s3, %s48_s21  ;;  %s4372_s13 = sadd.s32 1, %s2707_s23 }
  0x3f   : > { %s2966_s28 = scalar_select %p51_p4, %s2719_s26, %s53_s12  }
  0x40   : > { %s2971_s11 = scalar_select %p79_p8, %s2707_s23, %s4372_s13  }
  0x41   : > { %4371 = sst [smem:[#allocation24_spill]] %s2966_s28  ;;  %p115_p9 = scmp.eq.s32.totalorder %s114_s24, 0 }
  0x42   : > { %s230_s1 = sand.u32 1, %s2719_s26   ;;  %s242_s10 = sadd.s32 %s2910_s5, %s4479_s22 }
  0x43   : > { %s2084_s4 = sshll.u32 %s230_s1, 4  ;;  %s2088_s9 = sshll.u32 %s242_s10, 3 }
  0x44   : > { %s234_s16 = scalar_lea.vmem [#allocation2], %s2084_s4  ;;  %s4373_s0 = sld [smem:[#allocation38_spill]] }
  0x45   : > { %s247_s14 = sshll.u32 %s234_s16, 4  ;;  %p2228_p10 = pnand %p2241_p13, %p2952_p3  ;;  %s248_s14 = int_to_ptr.vmem [resolvable:$true] %s247_s14 }
  0x46   : > { %s231_s22 = scalar_lea.sflag [#allocation3], %s230_s1  ;;  %s2744_s10 = smov 128  }
  0x47   : > { %s2745_s30 = smov 8   ;;  %s4374_s29 = smov 2048  }
  0x48   : > { %s117_s4 = sadd.s32 1, %s2695_s20  ;;  %p124_p0 = scmp.ne.s32.totalorder %s2695_s20, %s2691_s19 }
  0x49   : > { %s2988_s16 = scalar_select %p115_p9, %s2695_s20, %s117_s4  }
  0x4a   : > { %s244_s12 = scalar_lea.hbm %s4373_s0, %s2088_s9  ;;  %p2992_p4 = por %p124_p0, %p61_p1 }
  0x4b   : > { %s245_s13 = sshll.u32 %s244_s12, 4  ;;  %p130_p3 = scmp.ne.s32.totalorder %s2691_s19, %s2687_s18  ;;  %s246_s13 = int_to_ptr.hbm [resolvable:$true] %s245_s13 }
  0x4c   : > { %2230 = dma.hbm_to_vmem [thread:$0]  (!%p2228_p10), %s246_s13, 256, %s248_s14, %s231_s22, %s4374_s29, %s2744_s10, %s2745_s30  }
  0x4d   : > { %s283_s17 = sand.u32 1, %s2695_s20   ;;  %s293_s1 = sadd.s32 %s2910_s5, %s4473_s15 }
  0x4e   : > { %p3003_p8 = por %p130_p3, %p67_p2  ;;  %s2093_s14 = sshll.u32 %s283_s17, 4 }
  0x4f   : > { %s2096_s21 = sshll.u32 %s293_s1, 3  ;;  %s4377_s13 = sld [smem:[#allocation40_spill]] }
  0x50   : > { %s285_s4 = scalar_lea.vmem [#allocation7], %s2093_s14  ;;  %p2234_p1 = pnand %p2241_p13, %p2992_p4 }
  0x51   : > { %s298_s0 = sshll.u32 %s285_s4, 4  ;;  %s299_s0 = int_to_ptr.vmem [resolvable:$true] %s298_s0 }
  0x53   : > { %310 = sbr.rel (%p2929_p5) target bundleno = 598 (0x256), region = 40 }
  0x55   : > { %s295_s22 = scalar_lea.hbm %s4377_s13, %s2096_s21 }
  0x56   : > { %s296_s28 = sshll.u32 %s295_s22, 4  ;;  %s297_s28 = int_to_ptr.hbm [resolvable:$true] %s296_s28 }
  0x57   : > { %2236 = dma.hbm_to_vmem [thread:$0]  (!%p2234_p1), %s297_s28, 256, %s299_s0, %s2923_s8, %s4374_s29, %s2744_s10, %s2745_s30  }
  0x58   : > { %s312_s5 = sand.u32 1, %s2715_s25  }
  0x59   : > { %s3019_s18 = sshll.u32 %s312_s5, 4  ;;  %s313_s15 = scalar_lea.sflag [#allocation3], %s312_s5 }
  0x5a   : > { %s316_s17 = scalar_lea.vmem [#allocation2], %s3019_s18 }
  0x5b   : > { %2670 = dma.done.wait (%p2958_p6), %s313_s15, 256  }
  0x5c   : > { %2672 = vsyncadd (%p2958_p6), %s313_s15, 4294967040  ;;  %s4378_s9 = sld [smem:[#allocation14_spill]]  ;;  %s322_s0 = sand.u32 1, %s2855_s7  }
  0x5d   : > { %s323_s8 = scalar_lea.sflag [#allocation6], %s322_s0 }
  0x62   : > { %s3028_s29 = sand.u32 1, %s4378_s9  }
  0x63   : > { %s2099_s30 = sshll.u32 %s3028_s29, 7 }
  0x64   : > { %s3031_s2 = scalar_lea.vmem [#allocation5], %s2099_s30 }
  0x65   : > { %2674 = dma.done.wait (%p2887_p7), %s323_s8, 2048  }
  0x66   : > { %2676 = vsyncadd (%p2887_p7), %s323_s8, 4294965248  ;;  %s334_s27 = sand.u32 1, %s2691_s19  }
  0x67   : > { %s3038_s28 = sshll.u32 %s334_s27, 4 }
  0x68   : > { %s336_s10 = scalar_lea.vmem [#allocation7], %s3038_s28 }
  0x69   : > { %2678 = dma.done.wait (%p3003_p8), %s323_s8, 256  }
  0x6a   : > { %2680 = vsyncadd (%p3003_p8), %s323_s8, 4294967040  ;;  %s4380_s7 = sld [smem:[#allocation15_spill]]  ;;  %v3047_v0 = vld [vmem:[%s3031_s2 + $0x48] sm:$0xff]  ;;  %v3050_v1 = vld [vmem:[%s3031_s2 + $0x50] sm:$0xff]  ;;  %s2746_s21 = smov 1   ;;  %vm516_vm0 = vcmask 130048  }
  0x6b   : > { %v3053_v2 = vld [vmem:[%s3031_s2 + $0x10] sm:$0xff]  ;;  %v2368_v3 = vpack.i.bf16 %v3050_v1, %v3047_v0  ;;  %v3058_v4 = vld [vmem:[%s3031_s2 + $0x18] sm:$0xff]  ;;  %v3061_v5 = vld [vmem:[%s3031_s2 + $0x40] sm:$0xff]  ;;  %601 = vmatpush.msra.mxu2 %v3050_v1  ;;  %572 = vmatpush.msra.mxu1 %v3047_v0  ;;  %s4381_s22 = sld [smem:[#allocation41_spill]]  ;;  %s2747_s9 = smov 127   ;;  %vm474_vm1 = vcmask 7168  }
  0x6c   : > { %v2378_v6 = vpack.i.bf16 %v3058_v4, %v3053_v2  ;;  %v3068_v7 = vld [vmem:[%s3031_s2] sm:$0xff]  ;;  %543 = vmatpush.msra.mxu0 %v3061_v5  ;;  %v396_v8 = vld [vmem:[%s3031_s2 + $0x58] sm:$0xff]  ;;  %v3078_v10 = vld [vmem:[%s3031_s2 + $0x8] sm:$0xff]  ;;  %v2428_v34 = vpack.i.bf16 %v3047_v0, %v3061_v5  ;;  %vm1037_vm2 = vcmask 1039360   ;;  %s4383_s13 = sld [smem:[#allocation42_spill]] }
  0x6d   : > { %2369 = vrot.lane.b32.xlu0 %v2368_v3, %s2746_s21  ;;  %602 = vmatpush.msra.mxu2 %v3053_v2  ;;  %v2373_v14 = vpack.i.bf16 %v3078_v10, %v396_v8  ;;  %v3096_v15 = vld [vmem:[%s3031_s2 + $0x68] sm:$0xff]  ;;  %v399_v16 = vld [vmem:[%s3031_s2 + $0x70] sm:$0xff]  ;;  %v397_v18 = vld [vmem:[%s3031_s2 + $0x60] sm:$0xff]  ;;  %v2413_v30 = vpack.i.bf16 %v396_v8, %v3050_v1  ;;  %v2433_v35 = vpack.i.bf16 %v3078_v10, %v3068_v7  ;;  %s4448_s15 = sld [smem:[#allocation43_spill]] }
  0x6e   : > { %2379 = vrot.lane.b32.xlu1 %v2378_v6, %s2746_s21  ;;  %630 = vmatpush.msra.mxu3 %v396_v8  ;;  %v400_v19 = vld [vmem:[%s3031_s2 + $0x78] sm:$0xff]  ;;  %v2393_v20 = vpack.i.bf16 %v399_v16, %v3096_v15  ;;  %v391_v21 = vld [vmem:[%s3031_s2 + $0x30] sm:$0xff]  ;;  %v390_v22 = vld [vmem:[%s3031_s2 + $0x28] sm:$0xff]  ;;  %v2418_v31 = vpack.i.bf16 %v3053_v2, %v397_v18 }
  0x6f   : > { %544 = vmatpush.msra.mxu0 %v3068_v7  ;;  %573 = vmatpush.msra.mxu1 %v3078_v10  ;;  %v389_v23 = vld [vmem:[%s3031_s2 + $0x20] sm:$0xff]  ;;  %v392_v24 = vld [vmem:[%s3031_s2 + $0x38] sm:$0xff]  ;;  %v2398_v26 = vpack.i.bf16 %v390_v22, %v400_v19  ;;  %v2438_v36 = vpack.i.bf16 %v400_v19, %v399_v16  ;;  %v2453_v41 = vpack.i.bf16 %v390_v22, %v3096_v15 }
  0x70   : > { %s2102_s14 = sshll.u32 %s4380_s7, 10  ;;  %631 = vmatpush.msra.mxu3 %v3058_v4  ;;  %717 = vmatpush.msrb.mxu2 %v399_v16  ;;  %v2403_v27 = vpack.i.bf16 %v392_v24, %v391_v21  ;;  %v2408_v28 = vpack.i.bf16 %v389_v23, %v397_v18  ;;  %v2423_v32 = vpack.i.bf16 %v389_v23, %v3058_v4 }
  0x71   : > { %p405_p2 = scmp.gt.s32.totalorder %s2102_s14, 0  ;;  %s3085_s24 = sadd.s32 1024, %s2102_s14  ;;  %v3091_v13 = vld [vmem:[%s4381_s22 + $0x20] sm:$0xff]  ;;  %659 = vmatpush.msrb.mxu0 %v397_v18  ;;  %688 = vmatpush.msrb.mxu1 %v3096_v15 }
  0x72   : > { %s4382_s4 = smov %s4381_s22  ;;  %2115 = vmatmul.msk.f32.vlgmr.msra.gmra.mxu2 %vm516_vm0, %v3091_v13  ;;  %2107 = vmatmul.msk.f32.vlgmr.msra.gmra.mxu0 %vm516_vm0, %v3091_v13  ;;  %p412_p7 = scmp.lt.s32.totalorder %s3085_s24, 2048 }
  0x73   : > { %s2468_s3 = scalar_select %p405_p2, 255, 0  ;;  %2111 = vmatmul.msk.f32.vlgmr.msra.gmra.mxu1 %vm516_vm0, %v3091_v13  ;;  %2119 = vmatmul.msk.f32.vlgmr.msra.gmra.mxu3 %vm516_vm0, %v3091_v13  ;;  %v2104_v25 = vld [vmem:[%s4382_s4 + $0x28] sm:$0xff]  ;;  %v2105_v29 = vld [vmem:[%s4382_s4 + $0x30] sm:$0xff]  ;;  %v2106_v33 = vld [vmem:[%s4382_s4 + $0x38] sm:$0xff] }
  0x74   : > { %746 = vmatpush.msrb.mxu3 %v400_v19  ;;  %718 = vmatpush.msrb.mxu2 %v391_v21  ;;  %s2474_s30 = scalar_select %p412_p7, 255, 0  ;;  %v3184_v0 = vld [vmem:[%s4382_s4] sm:$0xff]  ;;  %v3206_v18 = vld [vmem:[%s4382_s4 + $0x8] sm:$0xff] }
  0x75   : > { %v2472_v9 = vld [vmem:[%s316_s17] sm:%s2468_s3]  ;;  %v2469_v12 = vld [vmem:[%s316_s17 + $0x8] sm:%s2468_s3]  ;;  %689 = vmatpush.msrb.mxu1 %v390_v22  ;;  %660 = vmatpush.msrb.mxu0 %v389_v23  ;;  %s2101_s14 = sshll.u32 %s3028_s29, 8  ;;  %s2208_s24 = sshll.u32 %s4380_s7, 3 }
  0x76   : > { %v2388_v11 = vpack.i.bf16 %v3068_v7, %v2472_v9  ;;  %v2383_v17 = vpack.i.bf16 %v3061_v5, %v2469_v12  ;;  %2374 = vrot.lane.b32.xlu0 %v2373_v14, %s2746_s21  ;;  %747 = vmatpush.msrb.mxu3 %v392_v24  ;;  %v2475_v37 = vld [vmem:[%s336_s10 + $0x8] sm:%s2474_s30]  ;;  %s4038_s3 = scalar_lea.vmem [#allocation8], %s2101_s14 }
  0x77   : > { %v2478_v38 = vld [vmem:[%s336_s10] sm:%s2474_s30]  ;;  %v2443_v39 = vpack.i.bf16 %v391_v21, %v2475_v37  ;;  %s1920_s30 = scalar_lea.sflag [#allocation4], %s3028_s29  ;;  %s2605_s10 = scalar_lea.hbm %s4448_s15, 1024 }
  0x78   : > { %2389 = vrot.lane.b32.xlu2 %v2388_v11, %s2746_s21  ;;  %2384 = vrot.lane.b32.xlu1 %v2383_v17, %s2746_s21  ;;  %v2448_v40 = vpack.i.bf16 %v2478_v38, %v392_v24 }
  0x7a   : > { %2116 = vmatmul.msk.f32.gmra.mxu2 %vm516_vm0, %v2104_v25  ;;  %2108 = vmatmul.msk.f32.gmra.mxu0 %vm516_vm0, %v2104_v25 }
  0x7b   : > { %2112 = vmatmul.msk.f32.gmra.mxu1 %vm516_vm0, %v2104_v25  ;;  %2120 = vmatmul.msk.f32.gmra.mxu3 %vm516_vm0, %v2104_v25 }
  0x7e   : > { %2399 = vrot.lane.b32.xlu0 %v2398_v26, %s2746_s21 }
  0x80   : > { %2394 = vrot.lane.b32.xlu2 %v2393_v20, %s2746_s21  ;;  %2404 = vrot.lane.b32.xlu1 %v2403_v27, %s2746_s21 }
  0x82   : > { %2117 = vmatmul.msk.f32.gmra.mxu2 %vm516_vm0, %v2105_v29  ;;  %2109 = vmatmul.msk.f32.gmra.mxu0 %vm516_vm0, %v2105_v29 }
  0x83   : > { %2113 = vmatmul.msk.f32.gmra.mxu1 %vm516_vm0, %v2105_v29  ;;  %2121 = vmatmul.msk.f32.gmra.mxu3 %vm516_vm0, %v2105_v29 }
  0x86   : > { %2414 = vrot.lane.b32.xlu0 %v2413_v30, %s2747_s9 }
  0x88   : > { %2409 = vrot.lane.b32.xlu2 %v2408_v28, %s2746_s21  ;;  %2419 = vrot.lane.b32.xlu1 %v2418_v31, %s2747_s9  ;;  %v3238_v28 = vld [vmem:[%s4382_s4 + $0x18] sm:$0xff]  ;;  %s4444_s21 = sld [smem:[#allocation16_spill]] }
  0x8a   : > { %2118 = vmatmul.msk.f32.gmra.mxu2 %vm516_vm0, %v2106_v33  ;;  %2110 = vmatmul.msk.f32.gmra.mxu0 %vm516_vm0, %v2106_v33 }
  0x8b   : > { %2114 = vmatmul.msk.f32.gmra.mxu1 %vm516_vm0, %v2106_v33  ;;  %2122 = vmatmul.msk.f32.gmra.mxu3 %vm516_vm0, %v2106_v33 }
  0x8e   : > { %2429 = vrot.lane.b32.xlu0 %v2428_v34, %s2747_s9  ;;  %s2209_s12 = sshll.u32 %s4444_s21, 6 }
  0x8f   : > { %s1931_s7 = sadd.s32 %s2209_s12, %s2208_s24 }
  0x90   : > { %2424 = vrot.lane.b32.xlu2 %v2423_v32, %s2747_s9  ;;  %2434 = vrot.lane.b32.xlu1 %v2433_v35, %s2747_s9  ;;  %s2210_s22 = sshll.u32 %s1931_s7, 3 }
  0x91   : > { %s1933_s17 = scalar_lea.hbm %s4448_s15, %s2210_s22 }
  0x92   : > { %2131 = vmatmul.msk.f32.vlgmr.msrb.gmra.mxu2 %vm516_vm0, %v3091_v13  ;;  %2123 = vmatmul.msk.f32.vlgmr.msrb.gmra.mxu0 %vm516_vm0, %v3091_v13  ;;  %s1936_s0 = sshll.u32 %s1933_s17, 4  ;;  %s1937_s0 = int_to_ptr.hbm [resolvable:$true] %s1936_s0 }
  0x93   : > { %2127 = vmatmul.msk.f32.vlgmr.msrb.gmra.mxu1 %vm516_vm0, %v3091_v13  ;;  %2135 = vmatmul.msk.f32.vlgmr.msrb.gmra.mxu3 %vm516_vm0, %v3091_v13  ;;  %s2599_s8 = sshra.s32 %s1937_s0, 4  ;;  %s2600_s8 = int_to_ptr.hbm [resolvable:$true] %s2599_s8 }
  0x94   : > { %s2601_s2 = scalar_lea.hbm %s2600_s8, 256  ;;  %p2606_p9 = scmp.lt.s32.totalorder %s2600_s8, %s4448_s15 }
  0x95   : > { %p2602_p13 = scmp.ne.s32.totalorder %s2600_s8, %s2601_s2  ;;  %p2607_p10 = scmp.lt.s32.totalorder %s2605_s10, %s2601_s2 }
  0x96   : > { %2444 = vrot.lane.b32.xlu0 %v2443_v39, %s2747_s9 }
  0x97   : > { %p2603_p5 = pnand %p2602_p13, %p2898_p11  ;;  %p2608_p0 = por %p2607_p10, %p2606_p9 }
  0x98   : > { %2439 = vrot.lane.b32.xlu2 %v2438_v36, %s2747_s9  ;;  %2449 = vrot.lane.b32.xlu1 %v2448_v40, %s2747_s9 }
  0x99   : > { %p2604_p6 = pneg %p2603_p5 }
  0x9a   : > { %2132 = vmatmul.msk.f32.gmra.mxu2 %vm516_vm0, %v2104_v25  ;;  %2124 = vmatmul.msk.f32.gmra.mxu0 %vm516_vm0, %v2104_v25 }
  0x9b   : > { %2128 = vmatmul.msk.f32.gmra.mxu1 %vm516_vm0, %v2104_v25  ;;  %2136 = vmatmul.msk.f32.gmra.mxu3 %vm516_vm0, %v2104_v25  ;;  %v3223_v25 = vld [vmem:[%s4382_s4 + $0x10] sm:$0xff]  ;;  %p2609_p4 = pnand %p2608_p0, %p2604_p6 }
  0xa0   : > { %2454 = vrot.lane.b32.xlu2 %v2453_v41, %s2747_s9  ;;  %s1934_s9 = sshll.u32 %s4038_s3, 4  ;;  %s1935_s9 = int_to_ptr.vmem [resolvable:$true] %s1934_s9 }
  0xa2   : > { %2133 = vmatmul.msk.f32.gmra.mxu2 %vm516_vm0, %v2105_v29  ;;  %2125 = vmatmul.msk.f32.gmra.mxu0 %vm516_vm0, %v2105_v29 }
  0xa3   : > { %2129 = vmatmul.msk.f32.gmra.mxu1 %vm516_vm0, %v2105_v29  ;;  %2137 = vmatmul.msk.f32.gmra.mxu3 %vm516_vm0, %v2105_v29 }
  0xaa   : > { %2134 = vmatmul.msk.f32.gmra.mxu2 %vm516_vm0, %v2106_v33  ;;  %2126 = vmatmul.msk.f32.gmra.mxu0 %vm516_vm0, %v2106_v33 }
  0xab   : > { %2130 = vmatmul.msk.f32.gmra.mxu1 %vm516_vm0, %v2106_v33  ;;  %2138 = vmatmul.msk.f32.gmra.mxu3 %vm516_vm0, %v2106_v33 }
  0xd2   : > { %v2390_v42 = vpop.permute.xlu2 %2389 }
  0xd3   : > { %v2391_v49 = vunpack.i.l.bf16 %v2390_v42  ;;  %v2392_v56 = vunpack.i.h.bf16 %v2390_v42 }
  0xd5   : > { %v505_v4 = vsel %vm474_vm1, %v2391_v49, %v2392_v56 }
  0xda   : > { %v2395_v44 = vpop.permute.xlu2 %2394 }
  0xdb   : > { %v2397_v59 = vunpack.i.h.bf16 %v2395_v44  ;;  %v2396_v60 = vunpack.i.l.bf16 %v2395_v44 }
  0xdd   : > { %v487_v9 = vsel %vm474_vm1, %v2396_v60, %v2397_v59 }
  0xdf   : > { %v2370_v43 = vpop.permute.xlu0 %2369 }
  0xe0   : > { %v2372_v45 = vunpack.i.h.bf16 %v2370_v43  ;;  %v2371_v46 = vunpack.i.l.bf16 %v2370_v43  ;;  %v2380_v47 = vpop.permute.xlu1 %2379 }
  0xe1   : > { %v2382_v51 = vunpack.i.h.bf16 %v2380_v47  ;;  %v2381_v52 = vunpack.i.l.bf16 %v2380_v47 }
  0xe2   : > { %v483_v48 = vsel %vm474_vm1, %v2371_v46, %v2372_v45  ;;  %v2410_v61 = vpop.permute.xlu2 %2409 }
  0xe3   : > { %845 = vmatpush.msra.mxu2 %v483_v48  ;;  %v2411_v1 = vunpack.i.l.bf16 %v2410_v61  ;;  %v477_v5 = vsel %vm474_vm1, %v2381_v52, %v2382_v51  ;;  %v2412_v6 = vunpack.i.h.bf16 %v2410_v61 }
  0xe5   : > { %v486_v8 = vsel %vm474_vm1, %v2411_v1, %v2396_v60  ;;  %v478_v15 = vsel %vm474_vm1, %v2382_v51, %v2412_v6 }
  0xe8   : > { %v2375_v50 = vpop.permute.xlu0 %2374 }
  0xe9   : > { %v2377_v54 = vunpack.i.h.bf16 %v2375_v50  ;;  %v2376_v55 = vunpack.i.l.bf16 %v2375_v50 }
  0xea   : > { %v2385_v53 = vpop.permute.xlu1 %2384  ;;  %v2425_v23 = vpop.permute.xlu2 %2424 }
  0xeb   : > { %v2387_v57 = vunpack.i.h.bf16 %v2385_v53  ;;  %v2386_v58 = vunpack.i.l.bf16 %v2385_v53  ;;  %v476_v62 = vsel %vm474_vm1, %v2377_v54, %v2381_v52  ;;  %v484_v63 = vsel %vm474_vm1, %v2372_v45, %v2376_v55 }
  0xec   : > { %846 = vmatpush.msra.mxu2 %v476_v62  ;;  %874 = vmatpush.msra.mxu3 %v484_v63  ;;  %v475_v7 = vsel %vm474_vm1, %v2392_v56, %v2377_v54  ;;  %v485_v10 = vsel %vm474_vm1, %v2376_v55, %v2411_v1  ;;  %v2426_v38 = vunpack.i.l.bf16 %v2425_v23  ;;  %v2427_v41 = vunpack.i.h.bf16 %v2425_v23  ;;  %v3281_v54 = vld [vmem:[%s4383_s13] sm:$0xff] }
  0xed   : > { %v506_v2 = vsel %vm474_vm1, %v2386_v58, %v2387_v57  ;;  %v482_v3 = vsel %vm474_vm1, %v2387_v57, %v2371_v46  ;;  %2147 = vmatmul.msk.f32.vlgmr.msra.gmra.mxu2 %vm516_vm0, %v3184_v0  ;;  %v2748_v55 = vmov 0  }
  0xee   : > { %787 = vmatpush.msra.mxu0 %v506_v2  ;;  %816 = vmatpush.msra.mxu1 %v482_v3  ;;  %v1041_v52 = vsel %vm1037_vm2, %v2426_v38, %v2427_v41 }
  0xef   : > { %875 = vmatpush.msra.mxu3 %v477_v5  ;;  %961 = vmatpush.msrb.mxu2 %v487_v9  ;;  %v3284_v56 = vpop.f32.mrf.mxu0 }
  0xf0   : > { %788 = vmatpush.msra.mxu0 %v505_v4  ;;  %817 = vmatpush.msra.mxu1 %v475_v7  ;;  %v2400_v11 = vpop.permute.xlu0 %2399  ;;  %v3286_v57 = vpop.f32.mrf.mxu1 }
  0xf1   : > { %2139 = vmatmul.msk.f32.vlgmr.msra.gmra.mxu0 %vm516_vm0, %v3184_v0  ;;  %2143 = vmatmul.msk.f32.vlgmr.msra.gmra.mxu1 %vm516_vm0, %v3184_v0  ;;  %v2402_v12 = vunpack.i.h.bf16 %v2400_v11  ;;  %v2401_v13 = vunpack.i.l.bf16 %v2400_v11  ;;  %v2171_v11 = vld [vmem:[%s4382_s4 + $0x40] sm:$0xff] }
  0xf2   : > { %2151 = vmatmul.msk.f32.vlgmr.msra.gmra.mxu3 %vm516_vm0, %v3184_v0  ;;  %903 = vmatpush.msrb.mxu0 %v485_v10  ;;  %v2405_v14 = vpop.permute.xlu1 %2404  ;;  %v3233_v27 = vpop.permute.xlu2 %2439 }
  0xf3   : > { %v2407_v16 = vunpack.i.h.bf16 %v2405_v14  ;;  %v2406_v17 = vunpack.i.l.bf16 %v2405_v14  ;;  %932 = vmatpush.msrb.mxu1 %v486_v8  ;;  %v488_v19 = vsel %vm474_vm1, %v2397_v59, %v2401_v13  ;;  %v479_v20 = vsel %vm474_vm1, %v2412_v6, %v2402_v12  ;;  %2458 = vset.pattern.permute.xlu0 %v2748_v55  ;;  %v3301_v59 = vld [vmem:[%s4383_s13 + $0x8] sm:$0xff] }
  0xf4   : > { %904 = vmatpush.msrb.mxu0 %v478_v15  ;;  %990 = vmatpush.msrb.mxu3 %v488_v19  ;;  %v2442_v61 = vunpack.i.h.bf16 %v3233_v27  ;;  %v2441_v62 = vunpack.i.l.bf16 %v3233_v27  ;;  %v2172_v19 = vld [vmem:[%s4382_s4 + $0x48] sm:$0xff] }
  0xf5   : > { %933 = vmatpush.msrb.mxu1 %v479_v20  ;;  %v480_v21 = vsel %vm474_vm1, %v2402_v12, %v2406_v17  ;;  %v481_v22 = vsel %vm474_vm1, %v2406_v17, %v2407_v16  ;;  %2148 = vmatmul.msk.f32.gmra.mxu2 %vm516_vm0, %v3206_v18  ;;  %v3296_v58 = vpop.f32.mrf.mxu2 }
  0xf6   : > { %962 = vmatpush.msrb.mxu2 %v480_v21  ;;  %991 = vmatpush.msrb.mxu3 %v481_v22  ;;  %v3304_v60 = vpop.f32.mrf.mxu3  ;;  %v1051_v6 = vsel %vm1037_vm2, %v2441_v62, %v2442_v61  ;;  %v2173_v22 = vld [vmem:[%s4382_s4 + $0x50] sm:$0xff] }
  0xf7   : > { %2459 = vset.pattern.permute.xlu1 %v2748_v55  ;;  %1365 = vperm.xlu0 %2458, %v3281_v54  }
  0xf8   : > { %v2415_v24 = vpop.permute.xlu0 %2414  ;;  %2460 = vset.pattern.permute.xlu2 %v2748_v55  ;;  %1370 = vperm.xlu1 %2459, %v3301_v59   ;;  %v3312_v1 = vpop.f32.mrf.mxu1 }
  0xf9   : > { %2140 = vmatmul.msk.f32.gmra.mxu0 %vm516_vm0, %v3206_v18  ;;  %2144 = vmatmul.msk.f32.gmra.mxu1 %vm516_vm0, %v3206_v18  ;;  %v2416_v30 = vunpack.i.l.bf16 %v2415_v24  ;;  %v2417_v34 = vunpack.i.h.bf16 %v2415_v24 }
  0xfa   : > { %2152 = vmatmul.msk.f32.gmra.mxu3 %vm516_vm0, %v3206_v18  ;;  %v2420_v26 = vpop.permute.xlu1 %2419  ;;  %v3248_v40 = vpop.permute.xlu2 %2454 }
  0xfb   : > { %v2421_v35 = vunpack.i.l.bf16 %v2420_v26  ;;  %v2422_v39 = vunpack.i.h.bf16 %v2420_v26  ;;  %v2456_v42 = vunpack.i.l.bf16 %v3248_v40  ;;  %v1047_v45 = vsel %vm1037_vm2, %v2416_v30, %v2417_v34  ;;  %v1361_v26 = vld [vmem:[%s4383_s13 + $0x10] sm:$0xff] }
  0xfc   : > { %v2457_v48 = vunpack.i.h.bf16 %v3248_v40  ;;  %1167 = vmatpush.msra.mxu2 %v1047_v45  ;;  %1375 = vperm.xlu2 %2460, %v1361_v26  }
  0xfd   : > { %2149 = vmatmul.msk.f32.gmra.mxu2 %vm516_vm0, %v3223_v25  ;;  %v1048_v46 = vsel %vm1037_vm2, %v2417_v34, %v2421_v35  ;;  %v1040_v50 = vsel %vm1037_vm2, %v2422_v39, %v2426_v38  ;;  %v1049_v51 = vsel %vm1037_vm2, %v2421_v35, %v2456_v42  ;;  %v1050_v5 = vsel %vm1037_vm2, %v2456_v42, %v2441_v62  ;;  %v3327_v12 = vpop.f32.mrf.mxu2 }
  0xfe   : > { %1196 = vmatpush.msra.mxu3 %v1048_v46  ;;  %1168 = vmatpush.msra.mxu2 %v1040_v50  ;;  %v1042_v53 = vsel %vm1037_vm2, %v2427_v41, %v2457_v48  ;;  %v3331_v14 = vpop.f32.mrf.mxu3 }
 0x100   : > { %v2430_v29 = vpop.permute.xlu0 %2429  ;;  %1197 = vmatpush.msra.mxu3 %v1041_v52  ;;  %v3339_v17 = vpop.f32.mrf.mxu1 }
 0x101   : > { %2141 = vmatmul.msk.f32.gmra.mxu0 %vm516_vm0, %v3223_v25  ;;  %2145 = vmatmul.msk.f32.gmra.mxu1 %vm516_vm0, %v3223_v25  ;;  %v2432_v31 = vunpack.i.h.bf16 %v2430_v29  ;;  %v2431_v32 = vunpack.i.l.bf16 %v2430_v29 }
 0x102   : > { %2153 = vmatmul.msk.f32.gmra.mxu3 %vm516_vm0, %v3223_v25  ;;  %v2435_v33 = vpop.permute.xlu1 %2434 }
 0x103   : > { %v2437_v36 = vunpack.i.h.bf16 %v2435_v33  ;;  %v2436_v37 = vunpack.i.l.bf16 %v2435_v33  ;;  %v1045_v43 = vsel %vm1037_vm2, %v2431_v32, %v2432_v31  ;;  %v1046_v44 = vsel %vm1037_vm2, %v2432_v31, %v2416_v30 }
 0x104   : > { %1109 = vmatpush.msra.mxu0 %v1045_v43  ;;  %1138 = vmatpush.msra.mxu1 %v1046_v44  ;;  %v2749_v44 = vmov 1  }
 0x105   : > { %2150 = vmatmul.msk.f32.gmra.mxu2 %vm516_vm0, %v3238_v28  ;;  %v1038_v47 = vsel %vm1037_vm2, %v2436_v37, %v2437_v36  ;;  %v1039_v49 = vsel %vm1037_vm2, %v2437_v36, %v2422_v39  ;;  %v3350_v20 = vpop.f32.mrf.mxu2  ;;  %2462 = vset.pattern.permute.xlu0 %v2749_v44 }
 0x106   : > { %1110 = vmatpush.msra.mxu0 %v1038_v47  ;;  %1139 = vmatpush.msra.mxu1 %v1039_v49  ;;  %v3355_v21 = vpop.f32.mrf.mxu3  ;;  %v2750_v49 = vmov 2  }
 0x107   : > { %1796 = vperm.xlu0 %2462, %v3301_v59   ;;  %2461 = vset.pattern.permute.xlu2 %v2749_v44 }
 0x108   : > { %v2445_v63 = vpop.permute.xlu0 %2444  ;;  %v3361_v23 = vpop.f32.mrf.mxu1  ;;  %1792 = vperm.xlu2 %2461, %v3281_v54  }
 0x109   : > { %2142 = vmatmul.msk.f32.gmra.mxu0 %vm516_vm0, %v3238_v28  ;;  %2146 = vmatmul.msk.f32.gmra.mxu1 %vm516_vm0, %v3238_v28  ;;  %v2447_v2 = vunpack.i.h.bf16 %v2445_v63  ;;  %v2446_v3 = vunpack.i.l.bf16 %v2445_v63 }
 0x10a   : > { %2154 = vmatmul.msk.f32.gmra.mxu3 %vm516_vm0, %v3238_v28  ;;  %v2450_v4 = vpop.permute.xlu1 %2449 }
 0x10b   : > { %v1077_v7 = vsel %vm1037_vm2, %v2442_v61, %v2446_v3  ;;  %v1043_v8 = vsel %vm1037_vm2, %v2457_v48, %v2447_v2  ;;  %v2452_v9 = vunpack.i.h.bf16 %v2450_v4  ;;  %v2451_v10 = vunpack.i.l.bf16 %v2450_v4 }
 0x10d   : > { %2163 = vmatmul.msk.f32.vlgmr.msrb.gmra.mxu2 %vm516_vm0, %v3184_v0  ;;  %v1044_v13 = vsel %vm1037_vm2, %v2447_v2, %v2451_v10  ;;  %v1076_v15 = vsel %vm1037_vm2, %v2451_v10, %v2452_v9 }
 0x10e   : > { %1283 = vmatpush.msrb.mxu2 %v1051_v6  ;;  %v3374_v27 = vpop.f32.mrf.mxu3 }
 0x10f   : > { %2466 = vset.pattern.permute.xlu0 %v2750_v49 }
 0x110   : > { %1284 = vmatpush.msrb.mxu2 %v1044_v13  ;;  %v3381_v30 = vpop.f32.mrf.mxu1  ;;  %1848 = vperm.xlu0 %2466, %v1361_v26  }
 0x111   : > { %2155 = vmatmul.msk.f32.vlgmr.msrb.gmra.mxu0 %vm516_vm0, %v3184_v0  ;;  %2159 = vmatmul.msk.f32.vlgmr.msrb.gmra.mxu1 %vm516_vm0, %v3184_v0 }
 0x112   : > { %2167 = vmatmul.msk.f32.vlgmr.msrb.gmra.mxu3 %vm516_vm0, %v3184_v0  ;;  %1225 = vmatpush.msrb.mxu0 %v1049_v51  ;;  %v3310_v0 = vpop.f32.mrf.mxu0 }
 0x113   : > { %1254 = vmatpush.msrb.mxu1 %v1050_v5  ;;  %1312 = vmatpush.msrb.mxu3 %v1077_v7 }
 0x114   : > { %1226 = vmatpush.msrb.mxu0 %v1042_v53 }
 0x115   : > { %2164 = vmatmul.msk.f32.gmra.mxu2 %vm516_vm0, %v3206_v18  ;;  %1255 = vmatpush.msrb.mxu1 %v1043_v8 }
 0x116   : > { %1313 = vmatpush.msrb.mxu3 %v1076_v15  ;;  %v3389_v32 = vpop.f32.mrf.mxu3 }
 0x118   : > { %v3392_v33 = vpop.f32.mrf.mxu1 }
 0x119   : > { %2156 = vmatmul.msk.f32.gmra.mxu0 %vm516_vm0, %v3206_v18  ;;  %2160 = vmatmul.msk.f32.gmra.mxu1 %vm516_vm0, %v3206_v18 }
 0x11a   : > { %2168 = vmatmul.msk.f32.gmra.mxu3 %vm516_vm0, %v3206_v18  ;;  %v3337_v16 = vpop.f32.mrf.mxu0  ;;  %v3344_v18 = vld [vmem:[%s4383_s13 + $0x18] sm:$0xff] }
 0x11b   : > { %1380 = vperm.xlu1 %2459, %v3344_v18   ;;  %1804 = vperm.xlu2 %2461, %v3344_v18  }
 0x11d   : > { %2165 = vmatmul.msk.f32.gmra.mxu2 %vm516_vm0, %v3223_v25 }
 0x11e   : > { %v3402_v36 = vpop.f32.mrf.mxu3 }
 0x120   : > { %v3409_v38 = vpop.f32.mrf.mxu1 }
 0x121   : > { %2157 = vmatmul.msk.f32.gmra.mxu0 %vm516_vm0, %v3223_v25  ;;  %2161 = vmatmul.msk.f32.gmra.mxu1 %vm516_vm0, %v3223_v25  ;;  %4384 = vst [vmem:[#allocation25_spill] sm:$0xff] %v3409_v38 }
 0x122   : > { %2169 = vmatmul.msk.f32.gmra.mxu3 %vm516_vm0, %v3223_v25  ;;  %v3363_v24 = vpop.f32.mrf.mxu0  ;;  %v3366_v25 = vpop.f32.mrf.mxu2 }
 0x123   : > { %2463 = vset.pattern.permute.xlu1 %v2749_v44  ;;  %2465 = vset.pattern.permute.xlu2 %v2750_v49 }
 0x124   : > { %1800 = vperm.xlu1 %2463, %v1361_v26   ;;  %1844 = vperm.xlu2 %2465, %v3301_v59  }
 0x125   : > { %2166 = vmatmul.msk.f32.gmra.mxu2 %vm516_vm0, %v3238_v28 }
 0x126   : > { %v3416_v40 = vpop.f32.mrf.mxu3 }
 0x127   : > { %4386 = vst [vmem:[#allocation27_spill] sm:$0xff] %v3416_v40 }
 0x128   : > { %v3419_v41 = vpop.f32.mrf.mxu1 }
 0x129   : > { %2158 = vmatmul.msk.f32.gmra.mxu0 %vm516_vm0, %v3238_v28  ;;  %2162 = vmatmul.msk.f32.gmra.mxu1 %vm516_vm0, %v3238_v28  ;;  %4387 = vst [vmem:[#allocation28_spill] sm:$0xff] %v3419_v41 }
 0x12a   : > { %2170 = vmatmul.msk.f32.gmra.mxu3 %vm516_vm0, %v3238_v28  ;;  %v2174_v28 = vld [vmem:[%s4382_s4 + $0x58] sm:$0xff]  ;;  %v3379_v29 = vpop.f32.mrf.mxu0  ;;  %v3387_v31 = vpop.f32.mrf.mxu2 }
 0x12c   : > { %2464 = vset.pattern.permute.xlu1 %v2750_v49 }
 0x12d   : > { %2183 = vmatmul.msk.f32.vlgmr.msra.gmra.mxu2 %vm516_vm0, %v2171_v11  ;;  %1840 = vperm.xlu1 %2464, %v3281_v54  }
 0x12e   : > { %v758_v45 = vpop.f32.mrf.mxu3 }
 0x131   : > { %2175 = vmatmul.msk.f32.vlgmr.msra.gmra.mxu0 %vm516_vm0, %v2171_v11  ;;  %2179 = vmatmul.msk.f32.vlgmr.msra.gmra.mxu1 %vm516_vm0, %v2171_v11 }
 0x132   : > { %2187 = vmatmul.msk.f32.vlgmr.msra.gmra.mxu3 %vm516_vm0, %v2171_v11  ;;  %v3394_v34 = vpop.f32.mrf.mxu0  ;;  %v3399_v35 = vpop.f32.mrf.mxu2 }
 0x135   : > { %2184 = vmatmul.msk.f32.gmra.mxu2 %vm516_vm0, %v2172_v19  ;;  %1852 = vperm.xlu1 %2464, %v3344_v18  }
 0x139   : > { %2176 = vmatmul.msk.f32.gmra.mxu0 %vm516_vm0, %v2172_v19  ;;  %2180 = vmatmul.msk.f32.gmra.mxu1 %vm516_vm0, %v2172_v19 }
 0x13a   : > { %2188 = vmatmul.msk.f32.gmra.mxu3 %vm516_vm0, %v2172_v19  ;;  %v3407_v37 = vpop.f32.mrf.mxu0  ;;  %v3411_v39 = vpop.f32.mrf.mxu2 }
 0x13b   : > { %4385 = vst [vmem:[#allocation26_spill] sm:$0xff] %v3411_v39 }
 0x13d   : > { %2185 = vmatmul.msk.f32.gmra.mxu2 %vm516_vm0, %v2173_v22 }
 0x141   : > { %2177 = vmatmul.msk.f32.gmra.mxu0 %vm516_vm0, %v2173_v22  ;;  %2181 = vmatmul.msk.f32.gmra.mxu1 %vm516_vm0, %v2173_v22 }
 0x142   : > { %2189 = vmatmul.msk.f32.gmra.mxu3 %vm516_vm0, %v2173_v22  ;;  %v3421_v42 = vpop.f32.mrf.mxu0  ;;  %v3424_v43 = vpop.f32.mrf.mxu2 }
 0x143   : > { %4388 = vst [vmem:[#allocation29_spill] sm:$0xff] %v3421_v42 }
 0x144   : > { %4389 = vst [vmem:[#allocation30_spill] sm:$0xff] %v3424_v43 }
 0x145   : > { %2186 = vmatmul.msk.f32.gmra.mxu2 %vm516_vm0, %v2174_v28 }
 0x149   : > { %2178 = vmatmul.msk.f32.gmra.mxu0 %vm516_vm0, %v2174_v28  ;;  %2182 = vmatmul.msk.f32.gmra.mxu1 %vm516_vm0, %v2174_v28 }
 0x14a   : > { %2190 = vmatmul.msk.f32.gmra.mxu3 %vm516_vm0, %v2174_v28 }
 0x14d   : > { %2199 = vmatmul.msk.f32.vlgmr.msrb.gmra.mxu2 %vm516_vm0, %v2171_v11 }
 0x151   : > { %2191 = vmatmul.msk.f32.vlgmr.msrb.gmra.mxu0 %vm516_vm0, %v2171_v11  ;;  %2195 = vmatmul.msk.f32.vlgmr.msrb.gmra.mxu1 %vm516_vm0, %v2171_v11 }
 0x152   : > { %2203 = vmatmul.msk.f32.vlgmr.msrb.gmra.mxu3 %vm516_vm0, %v2171_v11 }
 0x155   : > { %2200 = vmatmul.msk.f32.gmra.mxu2 %vm516_vm0, %v2172_v19 }
 0x159   : > { %2192 = vmatmul.msk.f32.gmra.mxu0 %vm516_vm0, %v2172_v19  ;;  %2196 = vmatmul.msk.f32.gmra.mxu1 %vm516_vm0, %v2172_v19 }
 0x15a   : > { %2204 = vmatmul.msk.f32.gmra.mxu3 %vm516_vm0, %v2172_v19 }
 0x15d   : > { %2201 = vmatmul.msk.f32.gmra.mxu2 %vm516_vm0, %v2173_v22 }
 0x161   : > { %2193 = vmatmul.msk.f32.gmra.mxu0 %vm516_vm0, %v2173_v22  ;;  %2197 = vmatmul.msk.f32.gmra.mxu1 %vm516_vm0, %v2173_v22 }
 0x162   : > { %2205 = vmatmul.msk.f32.gmra.mxu3 %vm516_vm0, %v2173_v22 }
 0x165   : > { %2202 = vmatmul.msk.f32.gmra.mxu2 %vm516_vm0, %v2174_v28 }
 0x169   : > { %2194 = vmatmul.msk.f32.gmra.mxu0 %vm516_vm0, %v2174_v28  ;;  %2198 = vmatmul.msk.f32.gmra.mxu1 %vm516_vm0, %v2174_v28 }
 0x16a   : > { %2206 = vmatmul.msk.f32.gmra.mxu3 %vm516_vm0, %v2174_v28 }
 0x16e   : > { %v790_v46 = vpop.f32.mrf.mxu0  ;;  %v819_v47 = vpop.f32.mrf.mxu1 }
 0x16f   : > { %v791_v40 = vadd.f32 %v790_v46, %v3284_v56  ;;  %v820_v39 = vadd.f32 %v819_v47, %v3286_v57 }
 0x170   : > { %v848_v48 = vpop.f32.mrf.mxu2 }
 0x175   : > { %v877_v50 = vpop.f32.mrf.mxu3 }
 0x176   : > { %v793_v51 = vpop.f32.mrf.mxu0  ;;  %v822_v52 = vpop.f32.mrf.mxu1 }
 0x178   : > { %v851_v53 = vpop.f32.mrf.mxu2 }
 0x17d   : > { %v880_v55 = vpop.f32.mrf.mxu3 }
 0x17e   : > { %v796_v61 = vpop.f32.mrf.mxu0  ;;  %v825_v62 = vpop.f32.mrf.mxu1 }
 0x180   : > { %v3435_v63 = vpop.f32.mrf.mxu2 }
 0x185   : > { %v3437_v2 = vpop.f32.mrf.mxu3 }
 0x186   : > { %v3439_v54 = vpop.f32.mrf.mxu0  ;;  %v3441_v3 = vpop.f32.mrf.mxu1 }
 0x188   : > { %v3443_v4 = vpop.f32.mrf.mxu2 }
 0x18d   : > { %v3445_v5 = vpop.f32.mrf.mxu3 }
 0x18e   : > { %v3447_v6 = vpop.f32.mrf.mxu0  ;;  %v3449_v7 = vpop.f32.mrf.mxu1 }
 0x190   : > { %v3451_v8 = vpop.f32.mrf.mxu2 }
 0x195   : > { %v3453_v59 = vpop.f32.mrf.mxu3 }
 0x196   : > { %v3455_v9 = vpop.f32.mrf.mxu0  ;;  %v3457_v10 = vpop.f32.mrf.mxu1 }
 0x198   : > { %v3459_v11 = vpop.f32.mrf.mxu2 }
 0x19d   : > { %v3461_v13 = vpop.f32.mrf.mxu3 }
 0x19e   : > { %v3463_v15 = vpop.f32.mrf.mxu0  ;;  %v3465_v18 = vpop.f32.mrf.mxu1 }
 0x19f   : > { %4390 = vst [vmem:[#allocation31_spill] sm:$0xff] %v3463_v15  ;;  %v3481_v15 = vpop.permute.xlu0 %1365 }
 0x1a0   : > { %4391 = vst [vmem:[#allocation32_spill] sm:$0xff] %v3465_v18  ;;  %v3467_v19 = vpop.f32.mrf.mxu2 }
 0x1a1   : > { %4392 = vst [vmem:[#allocation33_spill] sm:$0xff] %v3467_v19 }
 0x1a5   : > { %v3469_v22 = vpop.f32.mrf.mxu3 }
 0x1a6   : > { %4393 = vst [vmem:[#allocation34_spill] sm:$0xff] %v3469_v22  ;;  %v3471_v26 = vpop.f32.mrf.mxu0  ;;  %v3473_v28 = vpop.f32.mrf.mxu1 }
 0x1a7   : > { %4394 = vst [vmem:[#allocation35_spill] sm:$0xff] %v3471_v26  ;;  %v849_v26 = vadd.f32 %v848_v48, %v3296_v58  ;;  %v878_v58 = vadd.f32 %v877_v50, %v3304_v60  ;;  %v881_v50 = vadd.f32 %v880_v55, %v3331_v14 }
 0x1a8   : > { %4395 = vst [vmem:[#allocation36_spill] sm:$0xff] %v3473_v28  ;;  %v3475_v44 = vpop.f32.mrf.mxu2  ;;  %v794_v28 = vadd.f32 %v793_v51, %v3310_v0  ;;  %v852_v0 = vadd.f32 %v851_v53, %v3327_v12  ;;  %v797_v53 = vadd.f32 %v796_v61, %v3337_v16 }
 0x1a9   : > { %4396 = vst [vmem:[#allocation37_spill] sm:$0xff] %v3475_v44  ;;  %v823_v44 = vadd.f32 %v822_v52, %v3312_v1 }
 0x1ad   : > { %v1002_v49 = vpop.f32.mrf.mxu3 }
 0x1ae   : > { %v3477_v43 = vadd.f32 %v1002_v49, %v758_v45  ;;  %v1112_v41 = vpop.f32.mrf.mxu0  ;;  %v1141_v42 = vpop.f32.mrf.mxu1 }
 0x1af   : > { %v1327_v18 = vadd.f32 %v1112_v41, %v791_v40  ;;  %v1328_v38 = vadd.f32 %v1141_v42, %v820_v39  ;;  %v3486_v45 = vpop.permute.xlu1 %1370 }
 0x1b0   : > { %v1170_v19 = vpop.f32.mrf.mxu2 }
 0x1b1   : > { %v3489_v49 = vadd.f32 %v3481_v15, %v1327_v18  ;;  %v3492_v56 = vadd.f32 %v3481_v15, %v1328_v38  ;;  %v1329_v40 = vadd.f32 %v1170_v19, %v849_v26  ;;  %v826_v19 = vadd.f32 %v825_v62, %v3339_v17 }
 0x1b3   : > { %v1415_v47 = vmax.f32 %v3489_v49, 0.0  ;;  %v4321_v38 = vmax.f32 %v3492_v56, 0.0  ;;  %v3505_v52 = vadd.f32 %v3481_v15, %v1329_v40 }
 0x1b5   : > { %v1199_v22 = vpop.f32.mrf.mxu3  ;;  %v4319_v61 = vmax.f32 %v3505_v52, 0.0 }
 0x1b6   : > { %v1115_v57 = vpop.f32.mrf.mxu0  ;;  %v1144_v39 = vpop.f32.mrf.mxu1  ;;  %v1330_v48 = vadd.f32 %v1199_v22, %v878_v58 }
 0x1b7   : > { %v1335_v41 = vadd.f32 %v1115_v57, %v794_v28  ;;  %v1336_v42 = vadd.f32 %v1144_v39, %v823_v44  ;;  %v3523_v57 = vpop.permute.xlu2 %1375 }
 0x1b8   : > { %v1173_v51 = vpop.f32.mrf.mxu2  ;;  %v3526_v14 = vadd.f32 %v3481_v15, %v1330_v48 }
 0x1b9   : > { %v3497_v1 = vadd.f32 %v3486_v45, %v1335_v41  ;;  %v3500_v46 = vadd.f32 %v3486_v45, %v1336_v42  ;;  %v1337_v12 = vadd.f32 %v1173_v51, %v852_v0  ;;  %v855_v42 = vadd.f32 %v3435_v63, %v3350_v20 }
 0x1ba   : > { %v4315_v51 = vmax.f32 %v3526_v14, 0.0 }
 0x1bb   : > { %v4312_v18 = vmax.f32 %v3497_v1, 0.0  ;;  %v4311_v60 = vmax.f32 %v3500_v46, 0.0  ;;  %v3521_v28 = vadd.f32 %v3486_v45, %v1337_v12 }
 0x1bd   : > { %v1447_v22 = vadd.f32 %v4312_v18, %v1415_v47  ;;  %v1456_v26 = vadd.f32 %v4311_v60, %v4321_v38  ;;  %v1202_v44 = vpop.f32.mrf.mxu3  ;;  %v4318_v62 = vmax.f32 %v3521_v28, 0.0 }
 0x1be   : > { %v1338_v16 = vadd.f32 %v1202_v44, %v881_v50  ;;  %v1118_v17 = vpop.f32.mrf.mxu0  ;;  %v1147_v55 = vpop.f32.mrf.mxu1  ;;  %v800_v44 = vadd.f32 %v3439_v54, %v3363_v24 }
 0x1bf   : > { %v1343_v39 = vadd.f32 %v1118_v17, %v797_v53  ;;  %v1344_v40 = vadd.f32 %v1147_v55, %v826_v19  ;;  %v1465_v58 = vadd.f32 %v4318_v62, %v4319_v61  ;;  %v884_v19 = vadd.f32 %v3437_v2, %v3355_v21  ;;  %v3566_v2 = vpop.permute.xlu1 %1380 }
 0x1c0   : > { %v3531_v41 = vadd.f32 %v3486_v45, %v1338_v16  ;;  %v1176_v50 = vpop.f32.mrf.mxu2  ;;  %v829_v17 = vadd.f32 %v3441_v3, %v3361_v23  ;;  %v858_v3 = vadd.f32 %v3443_v4, %v3366_v25  ;;  %v887_v25 = vadd.f32 %v3445_v5, %v3374_v27 }
 0x1c1   : > { %v3540_v0 = vadd.f32 %v3523_v57, %v1343_v39  ;;  %v3543_v48 = vadd.f32 %v3523_v57, %v1344_v40  ;;  %v1345_v63 = vadd.f32 %v1176_v50, %v855_v42  ;;  %v907_v4 = vadd.f32 %v3447_v6, %v3379_v29 }
 0x1c2   : > { %v4314_v12 = vmax.f32 %v3531_v41, 0.0  ;;  %v994_v29 = vadd.f32 %v3453_v59, %v3389_v32  ;;  %v939_v6 = vadd.f32 %v3457_v10, %v3392_v33  ;;  %v4397_v32 = vld [vmem:[#allocation31_spill] sm:$0xff]  ;;  %v4399_v10 = vld [vmem:[#allocation32_spill] sm:$0xff] }
 0x1c3   : > { %v1431_v53 = vmax.f32 %v3540_v0, 0.0  ;;  %v1432_v20 = vmax.f32 %v3543_v48, 0.0  ;;  %v3564_v40 = vadd.f32 %v3523_v57, %v1345_v63 }
 0x1c4   : > { %v1474_v16 = vadd.f32 %v4314_v12, %v4315_v51  ;;  %v4404_v12 = vld [vmem:[#allocation29_spill] sm:$0xff] }
 0x1c5   : > { %v1448_v55 = vadd.f32 %v1447_v22, %v1431_v53  ;;  %v1457_v39 = vadd.f32 %v1456_v26, %v1432_v20  ;;  %v1205_v21 = vpop.f32.mrf.mxu3  ;;  %v4317_v50 = vmax.f32 %v3564_v40, 0.0 }
 0x1c6   : > { %v1346_v24 = vadd.f32 %v1205_v21, %v884_v19  ;;  %v1121_v54 = vpop.f32.mrf.mxu0  ;;  %v1150_v42 = vpop.f32.mrf.mxu1 }
 0x1c7   : > { %v1351_v60 = vadd.f32 %v1121_v54, %v800_v44  ;;  %v1352_v18 = vadd.f32 %v1150_v42, %v829_v17  ;;  %v1466_v22 = vadd.f32 %v1465_v58, %v4317_v50  ;;  %v965_v58 = vadd.f32 %v3451_v8, %v3387_v31 }
 0x1c8   : > { %v3570_v23 = vadd.f32 %v3523_v57, %v1346_v24  ;;  %v1179_v21 = vpop.f32.mrf.mxu2 }
 0x1c9   : > { %v3577_v26 = vadd.f32 %v3566_v2, %v1351_v60  ;;  %v3580_v63 = vadd.f32 %v3566_v2, %v1352_v18  ;;  %v1353_v24 = vadd.f32 %v1179_v21, %v858_v3  ;;  %v936_v60 = vadd.f32 %v3449_v7, %v3381_v30 }
 0x1ca   : > { %v4313_v19 = vmax.f32 %v3570_v23, 0.0  ;;  %v910_v30 = vadd.f32 %v3455_v9, %v3394_v34  ;;  %v3613_v21 = vadd.f32 %v3461_v13, %v3402_v36  ;;  %v3617_v34 = vadd.f32 %v4397_v32, %v3407_v37  ;;  %v4398_v9 = vld [vmem:[#allocation25_spill] sm:$0xff]  ;;  %v4403_v37 = vld [vmem:[#allocation34_spill] sm:$0xff] }
 0x1cb   : > { %v1439_v44 = vmax.f32 %v3577_v26, 0.0  ;;  %v1440_v17 = vmax.f32 %v3580_v63, 0.0  ;;  %v3600_v27 = vadd.f32 %v3566_v2, %v1353_v24  ;;  %v3624_v24 = vadd.f32 %v4399_v10, %v4398_v9  ;;  %v4401_v36 = vld [vmem:[#allocation33_spill] sm:$0xff]  ;;  %v4405_v9 = vld [vmem:[#allocation35_spill] sm:$0xff] }
 0x1cc   : > { %v1475_v18 = vadd.f32 %v1474_v16, %v4313_v19  ;;  %v968_v16 = vadd.f32 %v3459_v11, %v3399_v35  ;;  %v4402_v19 = vld [vmem:[#allocation27_spill] sm:$0xff]  ;;  %v3639_v10 = vadd.f32 %v4405_v9, %v4404_v12 }
 0x1cd   : > { %v1449_v54 = vadd.f32 %v1448_v55, %v1439_v44  ;;  %v1458_v42 = vadd.f32 %v1457_v39, %v1440_v17  ;;  %v1208_v5 = vpop.f32.mrf.mxu3  ;;  %v4316_v3 = vmax.f32 %v3600_v27, 0.0  ;;  %v3634_v32 = vadd.f32 %v4403_v37, %v4402_v19 }
 0x1ce   : > { %v1354_v31 = vadd.f32 %v1208_v5, %v887_v25  ;;  %v1228_v7 = vpop.f32.mrf.mxu0  ;;  %v1257_v8 = vpop.f32.mrf.mxu1  ;;  %v4400_v5 = vld [vmem:[#allocation26_spill] sm:$0xff]  ;;  %v4417_v49 = vmax.f32 %v3600_v27, 0.0 }
 0x1cf   : > { %v1450_v55 = vrot.slane %v1449_v54, 4  ;;  %v1459_v39 = vrot.slane %v1458_v42, 4  ;;  %v1331_v59 = vadd.f32 %v1228_v7, %v907_v4  ;;  %v1467_v25 = vadd.f32 %v1466_v22, %v4316_v3  ;;  %v4406_v22 = vld [vmem:[#allocation28_spill] sm:$0xff] }
 0x1d0   : > { %v3620_v33 = vadd.f32 %v3566_v2, %v1354_v31  ;;  %v3630_v13 = vadd.f32 %v4401_v36, %v4400_v5  ;;  %v1332_v4 = vadd.f32 %v1257_v8, %v936_v60  ;;  %v1286_v7 = vpop.f32.mrf.mxu2  ;;  %v4408_v60 = vld [vmem:[#allocation30_spill] sm:$0xff]  ;;  %v4409_v8 = vld [vmem:[#allocation37_spill] sm:$0xff] }
 0x1d1   : > { %v1451_v35 = vadd.f32 %v1450_v55, %v1449_v54  ;;  %v1460_v11 = vadd.f32 %v1459_v39, %v1458_v42  ;;  %v1468_v55 = vrot.slane %v1467_v25, 4  ;;  %v4407_v39 = vld [vmem:[#allocation36_spill] sm:$0xff]  ;;  %v3648_v19 = vadd.f32 %v3481_v15, %v1331_v59 }
 0x1d2   : > { %v4320_v31 = vmax.f32 %v3620_v33, 0.0  ;;  %v3643_v51 = vadd.f32 %v4407_v39, %v4406_v22  ;;  %v1333_v36 = vadd.f32 %v1286_v7, %v965_v58  ;;  %v3652_v37 = vadd.f32 %v4409_v8, %v4408_v60 }
 0x1d3   : > { %v1452_v54 = vrot.slane %v1451_v35, 2  ;;  %v1461_v42 = vrot.slane %v1460_v11, 2  ;;  %v1469_v3 = vadd.f32 %v1468_v55, %v1467_v25  ;;  %v3655_v61 = vadd.f32 %v3481_v15, %v1332_v4 }
 0x1d4   : > { %v1476_v5 = vadd.f32 %v1475_v18, %v4320_v31  ;;  %v3658_v22 = vadd.f32 %v3481_v15, %v1333_v36 }
 0x1d5   : > { %v1453_v12 = vadd.f32 %v1452_v54, %v1451_v35  ;;  %v1462_v9 = vadd.f32 %v1461_v42, %v1460_v11  ;;  %v1315_v50 = vpop.f32.mrf.mxu3  ;;  %v1470_v7 = vrot.slane %v1469_v3, 2  ;;  %v4329_v35 = vmax.f32 %v3648_v19, 0.0 }
 0x1d6   : > { %v1477_v62 = vrot.slane %v1476_v5, 4  ;;  %v1334_v18 = vadd.f32 %v1315_v50, %v994_v29  ;;  %v1231_v39 = vpop.f32.mrf.mxu0  ;;  %v1260_v59 = vpop.f32.mrf.mxu1  ;;  %v4327_v29 = vmax.f32 %v3655_v61, 0.0  ;;  %v4325_v36 = vmax.f32 %v3658_v22, 0.0 }
 0x1d7   : > { %v1454_v31 = vrot.slane %v1453_v12, 1  ;;  %v1463_v58 = vrot.slane %v1462_v9, 1  ;;  %v1339_v38 = vadd.f32 %v1231_v39, %v910_v30  ;;  %v1340_v25 = vadd.f32 %v1260_v59, %v939_v6 }
 0x1d8   : > { %v1478_v60 = vadd.f32 %v1477_v62, %v1476_v5  ;;  %v3662_v11 = vadd.f32 %v3481_v15, %v1334_v18  ;;  %v1471_v42 = vadd.f32 %v1470_v7, %v1469_v3  ;;  %v1289_v62 = vpop.f32.mrf.mxu2 }
 0x1d9   : > { %v1455_v54 = vadd.f32 %v1454_v31, %v1453_v12  ;;  %v1464_v4 = vadd.f32 %v1463_v58, %v1462_v9  ;;  %v3665_v55 = vadd.f32 %v3486_v45, %v1339_v38  ;;  %v3670_v30 = vadd.f32 %v3486_v45, %v1340_v25 }
 0x1da   : > { %v1479_v50 = vrot.slane %v1478_v60, 2  ;;  %v1472_v6 = vrot.slane %v1471_v42, 1  ;;  %v4324_v38 = vmax.f32 %v3662_v11, 0.0  ;;  %v1341_v12 = vadd.f32 %v1289_v62, %v968_v16 }
 0x1db   : > { %v3672_v5 = vmul.f32 0.03125, %v1455_v54  ;;  %v3674_v15 = vmul.f32 0.03125, %v1464_v4  ;;  %v4328_v31 = vmax.f32 %v3665_v55, 0.0  ;;  %v4326_v8 = vmax.f32 %v3670_v30, 0.0 }
 0x1dc   : > { %v1480_v3 = vadd.f32 %v1479_v50, %v1478_v60  ;;  %v1473_v58 = vadd.f32 %v1472_v6, %v1471_v42  ;;  %v4413_v6 = vmax.f32 %v3492_v56, 0.0 }
 0x1dd   : > { %v3682_v9 = vsub.f32 %v1431_v53, %v3672_v5  ;;  %v3687_v18 = vsub.f32 %v1432_v20, %v3674_v15  ;;  %v3692_v39 = vsub.f32 %v1439_v44, %v3672_v5  ;;  %v3697_v59 = vsub.f32 %v1440_v17, %v3674_v15  ;;  %v1318_v16 = vpop.f32.mrf.mxu3 }
 0x1de   : > { %v1481_v0 = vrot.slane %v1480_v3, 1  ;;  %v1483_v48 = vadd.f32 %v4328_v31, %v4329_v35  ;;  %v1492_v53 = vadd.f32 %v4326_v8, %v4327_v29  ;;  %v1234_v20 = vpop.f32.mrf.mxu0  ;;  %v1263_v26 = vpop.f32.mrf.mxu1  ;;  %v3716_v17 = vadd.f32 %v3486_v45, %v1341_v12 }
 0x1df   : > { %4410 = vst [vmem:[#allocation31_spill] sm:$0xff] %v3687_v18  ;;  %v3709_v63 = vmul.f32 %v3692_v39, %v3692_v39  ;;  %v3713_v44 = vmul.f32 %v3697_v59, %v3697_v59  ;;  %v1342_v7 = vadd.f32 %v1318_v16, %v3613_v21  ;;  %v1521_v60 = vmul.f32 0.03125, %v1473_v58 }
 0x1e0   : > { %4411 = vst [vmem:[#allocation25_spill] sm:$0xff] %v3692_v39  ;;  %v1482_v25 = vadd.f32 %v1481_v0, %v1480_v3  ;;  %v1347_v54 = vadd.f32 %v1234_v20, %v3617_v34  ;;  %v1348_v4 = vadd.f32 %v1263_v26, %v3624_v24  ;;  %v4322_v42 = vmax.f32 %v3716_v17, 0.0  ;;  %v1292_v58 = vpop.f32.mrf.mxu2 }
 0x1e1   : > { %4412 = vst [vmem:[#allocation32_spill] sm:$0xff] %v3697_v59  ;;  %v3723_v50 = vadd.f32 %v3486_v45, %v1342_v7  ;;  %v3728_v62 = vsub.f32 %v1415_v47, %v3672_v5  ;;  %v3733_v21 = vsub.f32 %v4413_v6, %v3674_v15  ;;  %v4414_v3 = vmax.f32 %v3505_v52, 0.0 }
 0x1e2   : > { %v4415_v24 = vmax.f32 %v3521_v28, 0.0  ;;  %v4416_v45 = vmax.f32 %v3564_v40, 0.0  ;;  %v3749_v47 = vsub.f32 %v4417_v49, %v1521_v60  ;;  %v1522_v56 = vmul.f32 0.03125, %v1482_v25 }
 0x1e3   : > { %v3737_v34 = vsub.f32 %v4414_v3, %v1521_v60  ;;  %v1501_v52 = vadd.f32 %v4322_v42, %v4325_v36  ;;  %v4323_v0 = vmax.f32 %v3723_v50, 0.0  ;;  %v3757_v28 = vadd.f32 %v3523_v57, %v1347_v54 }
 0x1e4   : > { %v3741_v12 = vsub.f32 %v4415_v24, %v1521_v60  ;;  %v3745_v16 = vsub.f32 %v4416_v45, %v1521_v60  ;;  %v1585_v26 = vmul.f32 %v3749_v47, %v3749_v47  ;;  %v4418_v7 = vmax.f32 %v3526_v14, 0.0 }
 0x1e5   : > { %v1561_v40 = vmul.f32 %v3737_v34, %v3737_v34  ;;  %v4419_v25 = vmax.f32 %v3531_v41, 0.0  ;;  %v4420_v6 = vmax.f32 %v3570_v23, 0.0  ;;  %v4421_v24 = vmax.f32 %v3620_v33, 0.0  ;;  %v1321_v49 = vpop.f32.mrf.mxu3 }
 0x1e6   : > { %v1569_v27 = vmul.f32 %v3741_v12, %v3741_v12  ;;  %v1577_v20 = vmul.f32 %v3745_v16, %v3745_v16  ;;  %v3769_v60 = vsub.f32 %v4418_v7, %v1522_v56  ;;  %v1510_v14 = vadd.f32 %v4323_v0, %v4324_v38  ;;  %v1266_v23 = vpop.f32.mrf.mxu1 }
 0x1e7   : > { %v3773_v54 = vsub.f32 %v4419_v25, %v1522_v56  ;;  %v3777_v3 = vsub.f32 %v4420_v6, %v1522_v56  ;;  %v3781_v45 = vsub.f32 %v4421_v24, %v1522_v56  ;;  %v4330_v7 = vmax.f32 %v3757_v28, 0.0  ;;  %v1237_v25 = vpop.f32.mrf.mxu0 }
 0x1e8   : > { %v1609_v42 = vadd.f32 %v1569_v27, %v1561_v40  ;;  %v3789_v41 = vadd.f32 %v3523_v57, %v1348_v4  ;;  %v1562_v6 = vmul.f32 %v3769_v60, %v3769_v60  ;;  %v1349_v0 = vadd.f32 %v1292_v58, %v3630_v13 }
 0x1e9   : > { %v1570_v33 = vmul.f32 %v3773_v54, %v3773_v54  ;;  %v1578_v56 = vmul.f32 %v3777_v3, %v3777_v3  ;;  %v1586_v40 = vmul.f32 %v3781_v45, %v3781_v45  ;;  %v1484_v24 = vadd.f32 %v1483_v48, %v4330_v7 }
 0x1ea   : > { %v1610_v27 = vadd.f32 %v1609_v42, %v1577_v20  ;;  %v4335_v4 = vmax.f32 %v3789_v41, 0.0  ;;  %v1350_v36 = vadd.f32 %v1321_v49, %v3634_v32  ;;  %v1355_v8 = vadd.f32 %v1237_v25, %v3639_v10  ;;  %v1295_v20 = vpop.f32.mrf.mxu2 }
 0x1eb   : > { %v1618_v38 = vadd.f32 %v1570_v33, %v1562_v6  ;;  %v1356_v29 = vadd.f32 %v1266_v23, %v3643_v51  ;;  %v3809_v42 = vadd.f32 %v3523_v57, %v1349_v0  ;;  %v4422_v48 = vmax.f32 %v3497_v1, 0.0 }
 0x1ec   : > { %v1611_v31 = vadd.f32 %v1610_v27, %v1585_v26  ;;  %v1493_v35 = vadd.f32 %v1492_v53, %v4335_v4  ;;  %v3817_v32 = vadd.f32 %v3523_v57, %v1350_v36  ;;  %v3820_v10 = vadd.f32 %v3566_v2, %v1355_v8 }
 0x1ed   : > { %v3814_v7 = vsub.f32 %v4422_v48, %v3672_v5  ;;  %v1619_v13 = vadd.f32 %v1618_v38, %v1578_v56  ;;  %v3823_v51 = vadd.f32 %v3566_v2, %v1356_v29  ;;  %v4333_v58 = vmax.f32 %v3809_v42, 0.0  ;;  %v1324_v26 = vpop.f32.mrf.mxu3 }
 0x1ee   : > { %v1612_v53 = vrot.slane %v1611_v31, 4  ;;  %v1357_v0 = vadd.f32 %v1295_v20, %v3652_v37  ;;  %v4424_v1 = vmax.f32 %v3500_v46, 0.0  ;;  %v4331_v57 = vmax.f32 %v3817_v32, 0.0 }
 0x1ef   : > { %4423 = vst [vmem:[#allocation26_spill] sm:$0xff] %v3814_v7  ;;  %v1620_v38 = vadd.f32 %v1619_v13, %v1586_v40  ;;  %v4336_v36 = vmax.f32 %v3820_v10, 0.0  ;;  %v4334_v8 = vmax.f32 %v3823_v51, 0.0  ;;  %v1502_v49 = vadd.f32 %v1501_v52, %v4333_v58 }
 0x1f0   : > { %v3830_v5 = vsub.f32 %v4424_v1, %v3674_v15  ;;  %v1613_v29 = vadd.f32 %v1612_v53, %v1611_v31  ;;  %v3838_v25 = vadd.f32 %v3566_v2, %v1357_v0  ;;  %v1358_v37 = vadd.f32 %v1324_v26, %v3477_v43 }
 0x1f1   : > { %v1621_v46 = vrot.slane %v1620_v38, 4  ;;  %v1511_v15 = vadd.f32 %v1510_v14, %v4331_v57  ;;  %v1485_v23 = vadd.f32 %v1484_v24, %v4336_v36  ;;  %v1494_v6 = vadd.f32 %v1493_v35, %v4334_v8 }
 0x1f2   : > { %4425 = vst [vmem:[#allocation33_spill] sm:$0xff] %v3830_v5  ;;  %v1614_v33 = vrot.slane %v1613_v29, 2  ;;  %v4332_v31 = vmax.f32 %v3838_v25, 0.0  ;;  %v3849_v52 = vadd.f32 %v3566_v2, %v1358_v37  ;;  %v1559_v56 = vmul.f32 %v3728_v62, %v3728_v62 }
 0x1f3   : > { %v1622_v43 = vadd.f32 %v1621_v46, %v1620_v38  ;;  %v1486_v40 = vrot.slane %v1485_v23, 4  ;;  %v1495_v27 = vrot.slane %v1494_v6, 4  ;;  %v1560_v14 = vmul.f32 %v3733_v21, %v3733_v21 }
 0x1f4   : > { %v1615_v20 = vadd.f32 %v1614_v33, %v1613_v29  ;;  %v1503_v24 = vadd.f32 %v1502_v49, %v4332_v31  ;;  %v4337_v35 = vmax.f32 %v3849_v52, 0.0  ;;  %v1567_v48 = vmul.f32 %v3814_v7, %v3814_v7 }
 0x1f5   : > { %v1623_v2 = vrot.slane %v1622_v43, 2  ;;  %v1487_v13 = vadd.f32 %v1486_v40, %v1485_v23  ;;  %v1496_v53 = vadd.f32 %v1495_v27, %v1494_v6  ;;  %v1568_v0 = vmul.f32 %v3830_v5, %v3830_v5 }
 0x1f6   : > { %v1616_v1 = vrot.slane %v1615_v20, 1  ;;  %v1504_v38 = vrot.slane %v1503_v24, 4  ;;  %v1512_v26 = vadd.f32 %v1511_v15, %v4337_v35  ;;  %v1575_v29 = vmul.f32 %v3682_v9, %v3682_v9 }
 0x1f7   : > { %v1624_v49 = vadd.f32 %v1623_v2, %v1622_v43  ;;  %v1488_v37 = vrot.slane %v1487_v13, 2  ;;  %v1497_v46 = vrot.slane %v1496_v53, 2  ;;  %v1576_v33 = vmul.f32 %v3687_v18, %v3687_v18 }
 0x1f8   : > { %v1617_v57 = vadd.f32 %v1616_v1, %v1615_v20  ;;  %v1505_v23 = vadd.f32 %v1504_v38, %v1503_v24  ;;  %v1513_v6 = vrot.slane %v1512_v26, 4  ;;  %v1591_v40 = vadd.f32 %v1567_v48, %v1559_v56 }
 0x1f9   : > { %v1625_v27 = vrot.slane %v1624_v49, 1  ;;  %v1489_v31 = vadd.f32 %v1488_v37, %v1487_v13  ;;  %v1498_v58 = vadd.f32 %v1497_v46, %v1496_v53  ;;  %v1600_v8 = vadd.f32 %v1568_v0, %v1560_v14 }
 0x1fa   : > { %v1665_v4 = vmul.f32 0.03125, %v1617_v57  ;;  %v1506_v36 = vrot.slane %v1505_v23, 2  ;;  %v1514_v15 = vadd.f32 %v1513_v6, %v1512_v26  ;;  %v1592_v35 = vadd.f32 %v1591_v40, %v1575_v29 }
 0x1fb   : > { %v1626_v5 = vadd.f32 %v1625_v27, %v1624_v49  ;;  %v1490_v7 = vrot.slane %v1489_v31, 1  ;;  %v1499_v43 = vrot.slane %v1498_v58, 1  ;;  %v1601_v2 = vadd.f32 %v1600_v8, %v1576_v33 }
 0x1fc   : > { %v3868_v59 = vadd.f32 1e-05, %v1665_v4  ;;  %v1507_v39 = vadd.f32 %v1506_v36, %v1505_v23  ;;  %v1515_v18 = vrot.slane %v1514_v15, 2  ;;  %v1593_v20 = vadd.f32 %v1592_v35, %v3709_v63 }
 0x1fd   : > { %v1666_v24 = vmul.f32 0.03125, %v1626_v5  ;;  %v1491_v56 = vadd.f32 %v1490_v7, %v1489_v31  ;;  %v1500_v48 = vadd.f32 %v1499_v43, %v1498_v58  ;;  %v1602_v13 = vadd.f32 %v1601_v2, %v3713_v44 }
 0x1fe   : > { %2479 = vrsqrt.f32 %v3868_v59  ;;  %v1508_v57 = vrot.slane %v1507_v39, 1  ;;  %v1516_v14 = vadd.f32 %v1515_v18, %v1514_v15  ;;  %v1594_v4 = vrot.slane %v1593_v20, 4 }
 0x1ff   : > { %v3873_v53 = vadd.f32 1e-05, %v1666_v24  ;;  %v1523_v0 = vmul.f32 0.03125, %v1491_v56  ;;  %v1524_v1 = vmul.f32 0.03125, %v1500_v48  ;;  %v4426_v36 = vmax.f32 %v3648_v19, 0.0 }
 0x200   : > { %v1509_v8 = vadd.f32 %v1508_v57, %v1507_v39  ;;  %v4427_v7 = vmax.f32 %v3665_v55, 0.0  ;;  %v1517_v44 = vrot.slane %v1516_v14, 1  ;;  %v4428_v5 = vmax.f32 %v3757_v28, 0.0 }
 0x201   : > { %2481 = vrsqrt.f32 %v3873_v53  ;;  %v3878_v63 = vsub.f32 %v4426_v36, %v1523_v0  ;;  %v4429_v31 = vmax.f32 %v3820_v10, 0.0  ;;  %v4430_v39 = vmax.f32 %v3655_v61, 0.0 }
 0x202   : > { %v3882_v58 = vsub.f32 %v4427_v7, %v1523_v0  ;;  %v3886_v18 = vsub.f32 %v4428_v5, %v1523_v0  ;;  %v4431_v19 = vmax.f32 %v3670_v30, 0.0  ;;  %v4432_v29 = vmax.f32 %v3789_v41, 0.0 }
 0x203   : > { %v3890_v35 = vsub.f32 %v4429_v31, %v1523_v0  ;;  %v3894_v38 = vsub.f32 %v4430_v39, %v1524_v1  ;;  %v1563_v55 = vmul.f32 %v3878_v63, %v3878_v63  ;;  %v4433_v10 = vmax.f32 %v3823_v51, 0.0 }
 0x204   : > { %v3898_v26 = vsub.f32 %v4431_v19, %v1524_v1  ;;  %v1571_v28 = vmul.f32 %v3882_v58, %v3882_v58  ;;  %v3906_v49 = vsub.f32 %v4432_v29, %v1524_v1  ;;  %v2480_v61 = vpop.eup %2479  ;;  %v1579_v30 = vmul.f32 %v3886_v18, %v3886_v18 }
 0x205   : > { %v3910_v37 = vsub.f32 %v4433_v10, %v1524_v1  ;;  %v1564_v46 = vmul.f32 %v3894_v38, %v3894_v38  ;;  %v1603_v23 = vrot.slane %v1602_v13, 4  ;;  %v1700_v6 = vmul.f32 %v2480_v61, %v3868_v59 }
 0x206   : > { %v1572_v33 = vmul.f32 %v3898_v26, %v3898_v26  ;;  %vm1705_vm3 = vweird.f32 %v3868_v59  ;;  %vm1706_vm4 = vweird.f32 %v2480_v61  ;;  %v1587_v41 = vmul.f32 %v3890_v35, %v3890_v35 }
 0x207   : > { %v1627_v51 = vadd.f32 %v1571_v28, %v1563_v55  ;;  %v1580_v40 = vmul.f32 %v3906_v49, %v3906_v49  ;;  %v1588_v27 = vmul.f32 %v3910_v37, %v3910_v37  ;;  %v1525_v43 = vmul.f32 0.03125, %v1509_v8  ;;  %v2482_v2 = vpop.eup %2481  ;;  %vm1707_vm7 = vmor %vm1705_vm3, %vm1706_vm4 }
 0x208   : > { %v1636_v15 = vadd.f32 %v1572_v33, %v1564_v46  ;;  %v1701_v24 = vmul.f32 %v2480_v61, %v1700_v6  ;;  %v1518_v48 = vadd.f32 %v1517_v44, %v1516_v14  ;;  %v3926_v57 = vadd.f32 %v1594_v4, %v1593_v20 }
 0x209   : > { %v1628_v56 = vadd.f32 %v1627_v51, %v1579_v30  ;;  %v1710_v0 = vmul.f32 %v2482_v2, %v3873_v53  ;;  %v4434_v36 = vmax.f32 %v3658_v22, 0.0  ;;  %v3933_v5 = vadd.f32 %v1603_v23, %v1602_v13 }
 0x20a   : > { %v1637_v1 = vadd.f32 %v1636_v15, %v1580_v40  ;;  %v1702_v31 = vmul.f32 0.5, %v1701_v24  ;;  %vm1715_vm5 = vweird.f32 %v3873_v53  ;;  %v4435_v8 = vmax.f32 %v3716_v17, 0.0 }
 0x20b   : > { %v3931_v7 = vsub.f32 %v4434_v36, %v1525_v43  ;;  %v1629_v39 = vadd.f32 %v1628_v56, %v1587_v41  ;;  %v4436_v20 = vmax.f32 %v3809_v42, 0.0  ;;  %v1711_v4 = vmul.f32 %v2482_v2, %v1710_v0 }
 0x20c   : > { %v3938_v19 = vsub.f32 %v4435_v8, %v1525_v43  ;;  %v1638_v44 = vadd.f32 %v1637_v1, %v1588_v27  ;;  %v4437_v22 = vmax.f32 %v3838_v25, 0.0  ;;  %v1703_v28 = vsub.f32 1.5, %v1702_v31 }
 0x20d   : > { %v3942_v14 = vsub.f32 %v4436_v20, %v1525_v43  ;;  %v1565_v13 = vmul.f32 %v3931_v7, %v3931_v7  ;;  %vm1716_vm6 = vweird.f32 %v2482_v2  ;;  %v1630_v29 = vrot.slane %v1629_v39, 4 }
 0x20e   : > { %v3946_v55 = vsub.f32 %v4437_v22, %v1525_v43  ;;  %v1573_v17 = vmul.f32 %v3938_v19, %v3938_v19  ;;  %v1712_v10 = vmul.f32 0.5, %v1711_v4  ;;  %v1639_v30 = vrot.slane %v1638_v44, 4  ;;  %vm1717_vm8 = vmor %vm1715_vm5, %vm1716_vm6 }
 0x20f   : > { %v1581_v42 = vmul.f32 %v3942_v14, %v3942_v14  ;;  %v1526_v46 = vmul.f32 0.03125, %v1518_v48  ;;  %v1704_v33 = vmul.f32 %v2480_v61, %v1703_v28  ;;  %v1631_v23 = vadd.f32 %v1630_v29, %v1629_v39 }
 0x210   : > { %v1589_v25 = vmul.f32 %v3946_v55, %v3946_v55  ;;  %v1645_v6 = vadd.f32 %v1573_v17, %v1565_v13  ;;  %v1713_v41 = vsub.f32 1.5, %v1712_v10  ;;  %v1640_v51 = vadd.f32 %v1639_v30, %v1638_v44 }
 0x211   : > { %v4438_v40 = vmax.f32 %v3662_v11, 0.0  ;;  %v4439_v15 = vmax.f32 %v3723_v50, 0.0  ;;  %v1708_v24 = vsel %vm1707_vm7, %v2480_v61, %v1704_v33  ;;  %v1632_v56 = vrot.slane %v1631_v23, 2  ;;  %v3979_v50 = vpop.permute.xlu1 %1800 }
 0x212   : > { %v1646_v48 = vadd.f32 %v1645_v6, %v1581_v42  ;;  %v4440_v0 = vmax.f32 %v3817_v32, 0.0  ;;  %v1761_v59 = vmul.f32 %v1708_v24, %v3737_v34  ;;  %v3973_v36 = vmul.f32 %v1708_v24, %v3741_v12 }
 0x213   : > { %v3961_v27 = vsub.f32 %v4438_v40, %v1526_v46  ;;  %v3965_v43 = vsub.f32 %v4439_v15, %v1526_v46  ;;  %v1777_v11 = vmul.f32 %v1708_v24, %v3745_v16  ;;  %v3977_v31 = vmul.f32 %v1708_v24, %v3749_v47  ;;  %v3992_v47 = vpop.permute.xlu2 %1792 }
 0x214   : > { %v3969_v1 = vsub.f32 %v4440_v0, %v1526_v46  ;;  %v1714_v39 = vmul.f32 %v2482_v2, %v1713_v41  ;;  %v1633_v61 = vadd.f32 %v1632_v56, %v1631_v23  ;;  %v1641_v8 = vrot.slane %v1640_v51, 2 }
 0x215   : > { %v1647_v20 = vadd.f32 %v1646_v48, %v1589_v25  ;;  %v4441_v34 = vmax.f32 %v3849_v52, 0.0  ;;  %v1566_v12 = vmul.f32 %v3961_v27, %v3961_v27  ;;  %v1574_v16 = vmul.f32 %v3965_v43, %v3965_v43 }
 0x216   : > { %v1596_v4 = vrot.slane %v3926_v57, 2  ;;  %v1718_v44 = vsel %vm1717_vm8, %v2482_v2, %v1714_v39  ;;  %v1634_v22 = vrot.slane %v1633_v61, 1  ;;  %v1642_v13 = vadd.f32 %v1641_v8, %v1640_v51 }
 0x217   : > { %v3986_v32 = vsub.f32 %v4441_v34, %v1526_v46  ;;  %v1648_v28 = vrot.slane %v1647_v20, 4  ;;  %v1762_v53 = vmul.f32 %v1718_v44, %v3769_v60  ;;  %v3997_v52 = vmul.f32 %v1718_v44, %v3773_v54  ;;  %v4007_v60 = vpop.permute.xlu0 %1796 }
 0x218   : > { %v1778_v29 = vmul.f32 %v1718_v44, %v3777_v3  ;;  %v4001_v17 = vmul.f32 %v1718_v44, %v3781_v45  ;;  %v1635_v10 = vadd.f32 %v1634_v22, %v1633_v61  ;;  %v1643_v30 = vrot.slane %v1642_v13, 1 }
 0x219   : > { %v1649_v42 = vadd.f32 %v1648_v28, %v1647_v20  ;;  %v1582_v46 = vmul.f32 %v3969_v1, %v3969_v1  ;;  %v1654_v2 = vadd.f32 %v1574_v16, %v1566_v12  ;;  %v1597_v33 = vadd.f32 %v1596_v4, %v3926_v57  ;;  %v4014_v0 = vpop.permute.xlu1 %1840 }
 0x21a   : > { %v1605_v23 = vrot.slane %v3933_v5, 2  ;;  %v1667_v54 = vmul.f32 0.03125, %v1635_v10  ;;  %v1644_v25 = vadd.f32 %v1643_v30, %v1642_v13  ;;  %v1590_v3 = vmul.f32 %v3986_v32, %v3986_v32 }
 0x21b   : > { %v1650_v6 = vrot.slane %v1649_v42, 2  ;;  %v1655_v45 = vadd.f32 %v1654_v2, %v1582_v46  ;;  %v1598_v41 = vrot.slane %v1597_v33, 1  ;;  %v4019_v12 = vpop.permute.xlu2 %1804  ;;  %v1809_v16 = vmul.f32 %v3992_v47, %v1761_v59 }
 0x21c   : > { %v1606_v51 = vadd.f32 %v1605_v23, %v3933_v5  ;;  %v4012_v40 = vadd.f32 1e-05, %v1667_v54  ;;  %v1668_v15 = vmul.f32 0.03125, %v1644_v25  ;;  %v1825_v13 = vmul.f32 %v3979_v50, %v1777_v11 }
 0x21d   : > { %v1651_v24 = vadd.f32 %v1650_v6, %v1649_v42  ;;  %v1656_v57 = vadd.f32 %v1655_v45, %v1590_v3  ;;  %v1599_v56 = vadd.f32 %v1598_v41, %v1597_v33  ;;  %v1810_v10 = vmul.f32 %v3992_v47, %v1762_v53 }
 0x21e   : > { %v1607_v48 = vrot.slane %v1606_v51, 1  ;;  %2483 = vrsqrt.f32 %v4012_v40  ;;  %v4017_v39 = vadd.f32 1e-05, %v1668_v15  ;;  %v1857_v30 = vadd.f32 %v4014_v0, %v1809_v16 }
 0x21f   : > { %v1652_v61 = vrot.slane %v1651_v24, 1  ;;  %v1657_v8 = vrot.slane %v1656_v57, 4  ;;  %v1663_v34 = vmul.f32 0.03125, %v1599_v56  ;;  %v1826_v42 = vmul.f32 %v3979_v50, %v1778_v29  ;;  %v4033_v59 = vpop.permute.xlu0 %1848 }
 0x220   : > { %v1608_v20 = vadd.f32 %v1607_v48, %v1606_v51  ;;  %2485 = vrsqrt.f32 %v4017_v39  ;;  %v1858_v54 = vadd.f32 %v4014_v0, %v1810_v10  ;;  %1889 = vst [vmem:[%s4038_s3 + $0x10] sm:$0xff] %v1857_v30  ;;  %v1873_v11 = vadd.f32 %v4033_v59, %v1825_v13 }
 0x221   : > { %v1653_v5 = vadd.f32 %v1652_v61, %v1651_v24  ;;  %v1658_v4 = vadd.f32 %v1657_v8, %v1656_v57  ;;  %v4024_v22 = vadd.f32 1e-05, %v1663_v34  ;;  %v1874_v53 = vadd.f32 %v4033_v59, %v1826_v42  ;;  %v4051_v15 = vpop.permute.xlu1 %1852 }
 0x222   : > { %v1664_v44 = vmul.f32 0.03125, %v1608_v20  ;;  %1890 = vst [vmem:[%s4038_s3 + $0x18] sm:$0xff] %v1858_v54  ;;  %v1833_v3 = vmul.f32 %v4019_v12, %v3977_v31  ;;  %v1834_v24 = vmul.f32 %v4019_v12, %v4001_v17  ;;  %v1817_v56 = vmul.f32 %v4007_v60, %v3973_v36 }
 0x223   : > { %v1669_v28 = vmul.f32 0.03125, %v1653_v5  ;;  %v1659_v46 = vrot.slane %v1658_v4, 2  ;;  %2487 = vrsqrt.f32 %v4024_v22  ;;  %1905 = vst [vmem:[%s4038_s3 + $0x90] sm:$0xff] %v1873_v11  ;;  %v1818_v31 = vmul.f32 %v4007_v60, %v3997_v52  ;;  %v4064_v34 = vpop.permute.xlu2 %1844 }
 0x224   : > { %v4030_v2 = vadd.f32 1e-05, %v1664_v44  ;;  %v2484_v33 = vpop.eup %2483  ;;  %1906 = vst [vmem:[%s4038_s3 + $0x98] sm:$0xff] %v1874_v53  ;;  %v1881_v57 = vadd.f32 %v4051_v15, %v1833_v3  ;;  %vm1725_vm9 = vweird.f32 %v4012_v40  ;;  %v1882_v5 = vadd.f32 %v4051_v15, %v1834_v24 }
 0x225   : > { %v4035_v23 = vadd.f32 1e-05, %v1669_v28  ;;  %v1720_v29 = vmul.f32 %v2484_v33, %v4012_v40  ;;  %v1660_v25 = vadd.f32 %v1659_v46, %v1658_v4  ;;  %vm1726_vm10 = vweird.f32 %v2484_v33 }
 0x226   : > { %2489 = vrsqrt.f32 %v4030_v2  ;;  %v2486_v6 = vpop.eup %2485  ;;  %1913 = vst [vmem:[%s4038_s3 + $0xd0] sm:$0xff] %v1881_v57  ;;  %v1865_v36 = vadd.f32 %v4064_v34, %v1817_v56  ;;  %v1866_v13 = vadd.f32 %v4064_v34, %v1818_v31  ;;  %vm1735_vm11 = vweird.f32 %v4017_v39  ;;  %vm1727_vm15 = vmor %vm1725_vm9, %vm1726_vm10 }
 0x227   : > { %2491 = vrsqrt.f32 %v4035_v23  ;;  %v1721_v45 = vmul.f32 %v2484_v33, %v1720_v29  ;;  %v1730_v41 = vmul.f32 %v2486_v6, %v4017_v39  ;;  %v1661_v51 = vrot.slane %v1660_v25, 1  ;;  %1914 = vst [vmem:[%s4038_s3 + $0xd8] sm:$0xff] %v1882_v5 }
 0x228   : > { %vm1685_vm12 = vweird.f32 %v4024_v22  ;;  %vm1736_vm13 = vweird.f32 %v2486_v6  ;;  %vm1745_vm14 = vweird.f32 %v4035_v23  ;;  %1897 = vst [vmem:[%s4038_s3 + $0x50] sm:$0xff] %v1865_v36  ;;  %vm1695_vm6 = vweird.f32 %v4030_v2 }
 0x229   : > { %v4061_v48 = vpop.eup %2487  ;;  %v1722_v61 = vmul.f32 0.5, %v1721_v45  ;;  %v1731_v8 = vmul.f32 %v2486_v6, %v1730_v41  ;;  %v1662_v20 = vadd.f32 %v1661_v51, %v1660_v25  ;;  %1898 = vst [vmem:[%s4038_s3 + $0x58] sm:$0xff] %v1866_v13  ;;  %vm1737_vm2 = vmor %vm1735_vm11, %vm1736_vm13 }
 0x22a   : > { %v1680_v17 = vmul.f32 %v4061_v48, %v4024_v22  ;;  %vm1686_vm0 = vweird.f32 %v4061_v48 }
 0x22b   : > { %v1723_v16 = vsub.f32 1.5, %v1722_v61  ;;  %v1732_v4 = vmul.f32 0.5, %v1731_v8  ;;  %v1670_v44 = vmul.f32 0.03125, %v1662_v20  ;;  %vm1687_vm4 = vmor %vm1685_vm12, %vm1686_vm0 }
 0x22c   : > { %v4071_v52 = vpop.eup %2489  ;;  %v1681_v10 = vmul.f32 %v4061_v48, %v1680_v17 }
 0x22d   : > { %v2492_v28 = vpop.eup %2491  ;;  %v1690_v30 = vmul.f32 %v4071_v52, %v4030_v2  ;;  %v1724_v42 = vmul.f32 %v2484_v33, %v1723_v16  ;;  %v1733_v46 = vsub.f32 1.5, %v1732_v4  ;;  %v4086_v11 = vadd.f32 1e-05, %v1670_v44 }
 0x22e   : > { %v1740_v54 = vmul.f32 %v2492_v28, %v4035_v23  ;;  %v1682_v53 = vmul.f32 0.5, %v1681_v10  ;;  %vm1696_vm1 = vweird.f32 %v4071_v52  ;;  %vm1746_vm3 = vweird.f32 %v2492_v28 }
 0x22f   : > { %v1728_v29 = vsel %vm1727_vm15, %v2484_v33, %v1724_v42  ;;  %v1734_v25 = vmul.f32 %v2486_v6, %v1733_v46  ;;  %v1691_v45 = vmul.f32 %v4071_v52, %v1690_v30  ;;  %2493 = vrsqrt.f32 %v4086_v11  ;;  %vm1747_vm5 = vmor %vm1745_vm14, %vm1746_vm3 }
 0x230   : > { %v1741_v3 = vmul.f32 %v2492_v28, %v1740_v54  ;;  %v1763_v41 = vmul.f32 %v1728_v29, %v3878_v63  ;;  %v4094_v51 = vmul.f32 %v1728_v29, %v3882_v58  ;;  %v1779_v40 = vmul.f32 %v1728_v29, %v3886_v18  ;;  %vm1697_vm7 = vmor %vm1695_vm6, %vm1696_vm1  ;;  %v4442_v54 = vld [vmem:[#allocation31_spill] sm:$0xff] }
 0x231   : > { %v1787_v24 = vmul.f32 %v1728_v29, %v3890_v35  ;;  %v1738_v57 = vsel %vm1737_vm2, %v2486_v6, %v1734_v25  ;;  %v1683_v35 = vsub.f32 1.5, %v1682_v53  ;;  %v1692_v61 = vmul.f32 0.5, %v1691_v45 }
 0x232   : > { %v1742_v56 = vmul.f32 0.5, %v1741_v3  ;;  %v1764_v33 = vmul.f32 %v1738_v57, %v3894_v38  ;;  %v4104_v63 = vmul.f32 %v1738_v57, %v3898_v26  ;;  %v1780_v58 = vmul.f32 %v1738_v57, %v3906_v49  ;;  %v4443_v3 = vld [vmem:[#allocation25_spill] sm:$0xff] }
 0x233   : > { %v1788_v18 = vmul.f32 %v1738_v57, %v3910_v37  ;;  %v1811_v39 = vmul.f32 %v3992_v47, %v1763_v41  ;;  %v1827_v8 = vmul.f32 %v3979_v50, %v1779_v40  ;;  %v1835_v38 = vmul.f32 %v4019_v12, %v1787_v24  ;;  %v4445_v57 = vld [vmem:[#allocation32_spill] sm:$0xff] }
 0x234   : > { %v1743_v31 = vsub.f32 1.5, %v1742_v56  ;;  %v1812_v6 = vmul.f32 %v3992_v47, %v1764_v33  ;;  %v1828_v20 = vmul.f32 %v3979_v50, %v1780_v58  ;;  %v1684_v17 = vmul.f32 %v4061_v48, %v1683_v35 }
 0x235   : > { %v1693_v49 = vsub.f32 1.5, %v1692_v61  ;;  %v1859_v37 = vadd.f32 %v4014_v0, %v1811_v39  ;;  %v1875_v36 = vadd.f32 %v4033_v59, %v1827_v8  ;;  %v2494_v4 = vpop.eup %2493  ;;  %v1883_v23 = vadd.f32 %v4051_v15, %v1835_v38 }
 0x236   : > { %v1744_v26 = vmul.f32 %v2492_v28, %v1743_v31  ;;  %v1860_v5 = vadd.f32 %v4014_v0, %v1812_v6  ;;  %v1876_v16 = vadd.f32 %v4033_v59, %v1828_v20  ;;  %v1688_v44 = vsel %vm1687_vm4, %v4061_v48, %v1684_v17  ;;  %v4446_v20 = vld [vmem:[#allocation26_spill] sm:$0xff] }
 0x237   : > { %v1694_v13 = vmul.f32 %v4071_v52, %v1693_v49  ;;  %1891 = vst [vmem:[%s4038_s3 + $0x20] sm:$0xff] %v1859_v37  ;;  %v1750_v48 = vmul.f32 %v2494_v4, %v4086_v11  ;;  %v1759_v46 = vmul.f32 %v1688_v44, %v3728_v62  ;;  %v1783_v62 = vmul.f32 %v1688_v44, %v4443_v3 }
 0x238   : > { %v1748_v22 = vsel %vm1747_vm5, %v2492_v28, %v1744_v26  ;;  %1892 = vst [vmem:[%s4038_s3 + $0x28] sm:$0xff] %v1860_v5  ;;  %vm1756_vm8 = vweird.f32 %v2494_v4  ;;  %v1767_v38 = vmul.f32 %v1688_v44, %v4446_v20  ;;  %v4447_v26 = vld [vmem:[#allocation33_spill] sm:$0xff]  ;;  %vm1755_vm9 = vweird.f32 %v4086_v11 }
 0x239   : > { %v1765_v10 = vmul.f32 %v1748_v22, %v3931_v7  ;;  %v4132_v2 = vmul.f32 %v1748_v22, %v3938_v19  ;;  %v1781_v30 = vmul.f32 %v1748_v22, %v3942_v14  ;;  %v1789_v42 = vmul.f32 %v1748_v22, %v3946_v55  ;;  %1907 = vst [vmem:[%s4038_s3 + $0xa0] sm:$0xff] %v1875_v36  ;;  %vm1757_vm10 = vmor %vm1755_vm9, %vm1756_vm8 }
 0x23a   : > { %v1698_v28 = vsel %vm1697_vm7, %v4071_v52, %v1694_v13  ;;  %v1836_v7 = vmul.f32 %v4019_v12, %v1788_v18  ;;  %v1775_v55 = vmul.f32 %v1688_v44, %v3682_v9  ;;  %1908 = vst [vmem:[%s4038_s3 + $0xa8] sm:$0xff] %v1876_v16  ;;  %v1751_v29 = vmul.f32 %v2494_v4, %v1750_v48 }
 0x23b   : > { %v1760_v19 = vmul.f32 %v1698_v28, %v3733_v21  ;;  %v1813_v14 = vmul.f32 %v3992_v47, %v1765_v10  ;;  %v1776_v53 = vmul.f32 %v1698_v28, %v4442_v54  ;;  %v1807_v25 = vmul.f32 %v3992_v47, %v1759_v46  ;;  %1915 = vst [vmem:[%s4038_s3 + $0xe0] sm:$0xff] %v1883_v23 }
 0x23c   : > { %v1829_v52 = vmul.f32 %v3979_v50, %v1781_v30  ;;  %v1823_v41 = vmul.f32 %v3979_v50, %v1775_v55  ;;  %v1752_v40 = vmul.f32 0.5, %v1751_v29  ;;  %v1784_v56 = vmul.f32 %v1698_v28, %v4445_v57 }
 0x23d   : > { %v1808_v45 = vmul.f32 %v3992_v47, %v1760_v19  ;;  %v1861_v21 = vadd.f32 %v4014_v0, %v1813_v14  ;;  %v1824_v9 = vmul.f32 %v3979_v50, %v1776_v53  ;;  %v1855_v24 = vadd.f32 %v4014_v0, %v1807_v25 }
 0x23e   : > { %v1871_v58 = vadd.f32 %v4033_v59, %v1823_v41  ;;  %v1831_v31 = vmul.f32 %v4019_v12, %v1783_v62  ;;  %v1753_v35 = vsub.f32 1.5, %v1752_v40  ;;  %v1877_v61 = vadd.f32 %v4033_v59, %v1829_v52 }
 0x23f   : > { %v1856_v33 = vadd.f32 %v4014_v0, %v1808_v45  ;;  %1893 = vst [vmem:[%s4038_s3 + $0x30] sm:$0xff] %v1861_v21  ;;  %v1872_v18 = vadd.f32 %v4033_v59, %v1824_v9  ;;  %v1832_v39 = vmul.f32 %v4019_v12, %v1784_v56  ;;  %v1837_v6 = vmul.f32 %v4019_v12, %v1789_v42 }
 0x240   : > { %1887 = vst [vmem:[%s4038_s3] sm:$0xff] %v1855_v24  ;;  %v1879_v8 = vadd.f32 %v4051_v15, %v1831_v31  ;;  %v1768_v17 = vmul.f32 %v1698_v28, %v4447_v26  ;;  %v1754_v49 = vmul.f32 %v2494_v4, %v1753_v35  ;;  %v1884_v5 = vadd.f32 %v4051_v15, %v1836_v7 }
 0x241   : > { %1888 = vst [vmem:[%s4038_s3 + $0x8] sm:$0xff] %v1856_v33  ;;  %v1880_v37 = vadd.f32 %v4051_v15, %v1832_v39  ;;  %v1815_v36 = vmul.f32 %v4007_v60, %v1767_v38  ;;  %v1885_v11 = vadd.f32 %v4051_v15, %v1837_v6  ;;  %v1819_v30 = vmul.f32 %v4007_v60, %v4094_v51 }
 0x242   : > { %1903 = vst [vmem:[%s4038_s3 + $0x80] sm:$0xff] %v1871_v58  ;;  %v1816_v16 = vmul.f32 %v4007_v60, %v1768_v17  ;;  %v1758_v22 = vsel %vm1757_vm10, %v2494_v4, %v1754_v49  ;;  %v1821_v51 = vmul.f32 %v4007_v60, %v4132_v2 }
 0x243   : > { %1904 = vst [vmem:[%s4038_s3 + $0x88] sm:$0xff] %v1872_v18  ;;  %v1766_v44 = vmul.f32 %v1758_v22, %v3961_v27  ;;  %v1774_v13 = vmul.f32 %v1758_v22, %v3965_v43  ;;  %v1782_v23 = vmul.f32 %v1758_v22, %v3969_v1  ;;  %v1790_v10 = vmul.f32 %v1758_v22, %v3986_v32 }
 0x244   : > { %1909 = vst [vmem:[%s4038_s3 + $0xb0] sm:$0xff] %v1877_v61  ;;  %v1863_v4 = vadd.f32 %v4064_v34, %v1815_v36  ;;  %v1864_v42 = vadd.f32 %v4064_v34, %v1816_v16  ;;  %v1820_v32 = vmul.f32 %v4007_v60, %v4104_v63 }
 0x245   : > { %1911 = vst [vmem:[%s4038_s3 + $0xc0] sm:$0xff] %v1879_v8  ;;  %v1814_v27 = vmul.f32 %v3992_v47, %v1766_v44  ;;  %v1830_v43 = vmul.f32 %v3979_v50, %v1782_v23  ;;  %v1838_v1 = vmul.f32 %v4019_v12, %v1790_v10  ;;  %v1822_v50 = vmul.f32 %v4007_v60, %v1774_v13 }
 0x246   : > { %1912 = vst [vmem:[%s4038_s3 + $0xc8] sm:$0xff] %v1880_v37  ;;  %v1867_v12 = vadd.f32 %v4064_v34, %v1819_v30 }
 0x247   : > { %1916 = vst [vmem:[%s4038_s3 + $0xe8] sm:$0xff] %v1884_v5  ;;  %v1862_v48 = vadd.f32 %v4014_v0, %v1814_v27  ;;  %v1878_v28 = vadd.f32 %v4033_v59, %v1830_v43  ;;  %v1886_v47 = vadd.f32 %v4051_v15, %v1838_v1  ;;  %v1868_v0 = vadd.f32 %v4064_v34, %v1820_v32 }
 0x248   : > { %1917 = vst [vmem:[%s4038_s3 + $0xf0] sm:$0xff] %v1885_v11  ;;  %v1869_v59 = vadd.f32 %v4064_v34, %v1821_v51  ;;  %v1870_v60 = vadd.f32 %v4064_v34, %v1822_v50 }
 0x249   : > { %1895 = vst [vmem:[%s4038_s3 + $0x40] sm:$0xff] %v1863_v4 }
 0x24a   : > { %1896 = vst [vmem:[%s4038_s3 + $0x48] sm:$0xff] %v1864_v42 }
 0x24b   : > { %1894 = vst [vmem:[%s4038_s3 + $0x38] sm:$0xff] %v1862_v48 }
 0x24c   : > { %1910 = vst [vmem:[%s4038_s3 + $0xb8] sm:$0xff] %v1878_v28 }
 0x24d   : > { %1918 = vst [vmem:[%s4038_s3 + $0xf8] sm:$0xff] %v1886_v47 }
 0x24e   : > { %1899 = vst [vmem:[%s4038_s3 + $0x60] sm:$0xff] %v1867_v12 }
 0x24f   : > { %1900 = vst [vmem:[%s4038_s3 + $0x68] sm:$0xff] %v1868_v0 }
 0x250   : > { %1901 = vst [vmem:[%s4038_s3 + $0x70] sm:$0xff] %v1869_v59 }
 0x251   : > { %1902 = vst [vmem:[%s4038_s3 + $0x78] sm:$0xff] %v1870_v60 }
 0x252   : > { %2612 = shalt.err (!%p2609_p4)
}
 0x253   : > { %s2751_s29 = smov 1024   ;;  %s2752_s3 = smov 2048  }
 0x254   : > { %s2753_s24 = smov 64  }
 0x255   : > { %2225 = dma.vmem_to_hbm [thread:$0]  (%p2898_p11), %s1935_s9, 4096, %s1937_s0, %s1920_s30, %s2751_s29, %s2752_s3, %s2753_s24  }
 0x256 PF: > { %s4450_s12 = sld [smem:[#allocation13_spill]]  ;;  %p2242_p3 = scmp.ge.s32.totalorder %s2739_s6, 2 }
 0x258   : > { %p2238_p8 = pnand %p2242_p3, %p2902_p12 }
 0x25a   : > { %p2239_p1 = pneg %p2238_p8 }
 0x25c   : > { %s1951_s22 = sand.u32 1, %s4450_s12  }
 0x25d   : > { %s1952_s5 = scalar_lea.sflag [#allocation4], %s1951_s22 }
 0x25e   : > { %2682 = dma.done.wait (%p2239_p1), %s1952_s5, 4096  }
 0x25f   : > { %2684 = vsyncadd (%p2239_p1), %s1952_s5, 4294963200  ;;  %s24_s6 = sadd.s32 1, %s2739_s6   ;;  %s4453_s21 = sld [smem:[#allocation14_spill]] }
 0x260   : > { %p4240_p2 = scmp.ge.s32.totalorder %s24_s6, 6   ;;  %s4454_s17 = sld [smem:[#allocation24_spill]] }
 0x261   : > { %s4455_s27 = sld [smem:[#allocation17_spill]]  ;;  %s4460_s18 = smov %s2691_s19 }
 0x262   : > { %s4456_s28 = sld [smem:[#allocation18_spill]]  ;;  %s4461_s19 = smov %s2695_s20 }
 0x263   : > { %s4457_s29 = sld [smem:[#allocation19_spill]]  ;;  %s4462_s20 = smov %s2988_s16 }
 0x264   : > { %s4458_s30 = sld [smem:[#allocation23_spill]]  ;;  %s4463_s22 = smov %s2707_s23 }
 0x265   : > { %s4464_s23 = smov %s2971_s11  ;;  %s4465_s24 = smov %s2715_s25 }
 0x266   : > { %s4466_s25 = smov %s2719_s26  ;;  %s4467_s26 = smov %s4454_s17 }
 0x267   :  { %23 = sbr.rel (!%p4240_p2) target bundleno = 19 (0x13), region = 111 }
 0x26c   :  { %1958 = vsyncpa [#allocation3], 1 }
 0x26d   :  { %1960 = vsyncpa [#allocation3 + $0x1], 1 }
 0x26e   :  { %1961 = vsyncpa [#allocation6], 1 }
 0x26f   :  { %1963 = vsyncpa [#allocation6 + $0x1], 1 }
 0x270   :  { %1964 = vsyncpa [#allocation4], 1 }
 0x271   :  { %1966 = vsyncpa [#allocation4 + $0x1], 1 }

</bundles_post_ra>
